<compile_context>
chip_gen: v7x
topology: tpu7x:2x2x1
jax: 0.10.0
libtpu: 0.0.40
codegen_flags: <defaults>
</compile_context>

<pallas_src>
import functools

import jax
import jax.numpy as jnp
from jax.experimental import pallas as pl
from jax.experimental.pallas import tpu as pltpu

BN_EPS = 1e-4
_LANE_TILE = 256      # output tile width on the lane (M) axis
_MIN_PALLAS_M = 128   # below this, masked stores + launch overhead dominate


# ----------------------------------------------------------------------------
# The single fused Pallas kernel:  out = W @ A (+ residual) (-> relu(out*s+b))
# ----------------------------------------------------------------------------
def _make_kernel(has_residual, has_epilogue, out_dtype):
    def kernel(*refs):
        o_ref = refs[-1]
        a = refs[0][...]                       # [K, tm]  bf16
        w = refs[1][...]                       # [N, K ]  bf16
        acc = jnp.dot(w, a, preferred_element_type=jnp.float32)   # [N, tm] f32
        i = 2
        if has_residual:
            acc = acc + refs[i][...].astype(jnp.float32)
            i += 1
        if has_epilogue:                       # folded BN(eval) + ReLU, f32 math
            sb = refs[i][...]                  # [N, 2] f32: (scale, bias)
            acc = jnp.maximum(acc * sb[:, 0:1] + sb[:, 1:2], 0.0)
        o_ref[...] = acc.astype(out_dtype)
    return kernel


def _round_up(x, m):
    return ((x + m - 1) // m) * m


def fused_op(a, w, *, residual=None, epilogue=None, out_dtype=jnp.bfloat16):
    """out[N, M] = w[N, K] @ a[K, M]  (+ residual[N, M])  (-> relu(out*s+b))."""
    N, K = w.shape
    K2, M = a.shape
    assert K == K2, (w.shape, a.shape)

    if M < _MIN_PALLAS_M:
        # Deep U levels: lane extent too small for a lane-dense Pallas tile;
        # let XLA fuse a single bf16 dot + elementwise instead.
        acc = jnp.dot(w.astype(jnp.bfloat16), a.astype(jnp.bfloat16),
                      preferred_element_type=jnp.float32)
        if residual is not None:
            acc = acc + residual.astype(jnp.float32)
        if epilogue is not None:
            s, b = epilogue
            acc = jnp.maximum(acc * s[:, None] + b[:, None], 0.0)
        return acc.astype(out_dtype)

    # K padded to a multiple of 16 (bf16 sublane packing); M padded to a fixed
    # lane tile so the grid is a cdiv grid with unmasked 256-wide stores.
    a = a.astype(jnp.bfloat16)
    w = w.astype(jnp.bfloat16)
    Kp = _round_up(K, 16)
    if Kp != K:
        a = jnp.pad(a, ((0, Kp - K), (0, 0)))
        w = jnp.pad(w, ((0, 0), (0, Kp - K)))

    tm = _LANE_TILE if M >= _LANE_TILE else _MIN_PALLAS_M
    n_tiles = pl.cdiv(M, tm)
    Mp = n_tiles * tm
    if Mp != M:
        a = jnp.pad(a, ((0, 0), (0, Mp - M)))
        if residual is not None:
            residual = jnp.pad(residual, ((0, 0), (0, Mp - M)))

    args = [a, w]
    in_specs = [pl.BlockSpec((Kp, tm), lambda j: (0, j)),
                pl.BlockSpec((N, Kp), lambda j: (0, 0))]
    if residual is not None:
        args.append(residual.astype(jnp.bfloat16))
        in_specs.append(pl.BlockSpec((N, tm), lambda j: (0, j)))
    if epilogue is not None:
        s, b = epilogue
        sb = jnp.stack([jnp.asarray(s, jnp.float32),
                        jnp.asarray(b, jnp.float32)], axis=1)     # [N, 2]
        args.append(sb)
        in_specs.append(pl.BlockSpec((N, 2), lambda j: (0, 0)))

    out_bpe = jnp.dtype(out_dtype).itemsize
    # Double-buffered per-block footprint (+1 MiB headroom); >= v5e's 16 MiB
    # default, capped at v7x's 64 MiB physical VMEM.
    need = 2 * (Kp * tm * 2 + N * Kp * 2
                + (N * tm * 2 if residual is not None else 0)
                + (max(N, 8) * 128 * 4 if epilogue is not None else 0)
                + N * tm * out_bpe) + (1 << 20)
    vmem_bytes = int(min(64 << 20, max(need, 16 << 20)))

    cost = pl.CostEstimate(
        flops=2 * N * Kp * Mp,
        transcendentals=0,
        bytes_accessed=(Kp * Mp + N * Kp
                        + (N * Mp if residual is not None else 0)) * 2
                       + N * Mp * out_bpe)

    kernel = _make_kernel(residual is not None, epilogue is not None, out_dtype)
    out = pl.pallas_call(
        kernel,
        out_shape=jax.ShapeDtypeStruct((N, Mp), out_dtype),
        grid=(n_tiles,),
        in_specs=in_specs,
        out_specs=pl.BlockSpec((N, tm), lambda j: (0, j)),
        compiler_params=pltpu.CompilerParams(
            dimension_semantics=("parallel",),   # v7x: shard M-tiles over 2 TCs
            vmem_limit_bytes=vmem_bytes),
        cost_estimate=cost,
    )(*args)
    return out[:, :M] if Mp != M else out


# ----------------------------------------------------------------------------
# Plain-JAX glue (transposed layout): folded BN+ReLU, im2col / col2vox
# ----------------------------------------------------------------------------
def bn_relu_T(x, scale, bias):
    """relu(bn(x)) on [C, M] (folded eval-mode BN), returned bf16.
    Applied BEFORE im2col so zero pads of the expanded operand stay exact."""
    y = jnp.maximum(x.astype(jnp.float32) * scale[:, None] + bias[:, None], 0.0)
    return y.astype(jnp.bfloat16)


def im2col_k3_T(x):
    """[C, D, H, W] -> [27*C, D*H*W]   (kernel 3, pad 1, stride 1; row = t*C+c)."""
    C, D, H, W = x.shape
    xp = jnp.pad(x, ((0, 0), (1, 1), (1, 1), (1, 1)))
    rows = [xp[:, dz:dz + D, dy:dy + H, dx:dx + W].reshape(C, D * H * W)
            for dz in range(3) for dy in range(3) for dx in range(3)]
    return jnp.concatenate(rows, axis=0)


def im2col_k2s2_T(x):
    """[C, D, H, W] -> [8*C, (D/2)(H/2)(W/2)]   (kernel 2, stride 2)."""
    C, D, H, W = x.shape
    x = x.reshape(C, D // 2, 2, H // 2, 2, W // 2, 2)
    x = x.transpose(2, 4, 6, 0, 1, 3, 5)          # [tz,ty,tx, C, dc, hc, wc]
    return x.reshape(8 * C, (D // 2) * (H // 2) * (W // 2))


def col2vox_k2s2_T(y, c, d, h, w):
    """[8*c, d*h*w] -> [c, 2d, 2h, 2w]   (transposed conv k=2, s=2 scatter)."""
    y = y.reshape(2, 2, 2, c, d, h, w)            # [tz,ty,tx, c, z, y, x]
    y = y.transpose(3, 4, 0, 5, 1, 6, 2)          # [c, z,tz, y,ty, x,tx]
    return y.reshape(c, 2 * d, 2 * h, 2 * w)


# ----------------------------------------------------------------------------
# ResidualBlock (PointGroup `block`) and UBlock forward — 2 fused calls / block
# ----------------------------------------------------------------------------
def residual_block_T(xs, spatial, p):
    """xs: list of bf16 input parts [C_i, M] (channel split, never concat'd
    as a feature tensor; parts become extra K rows of the fused matmuls)."""
    D, H, W = spatial
    cout = p["w2T"].shape[0]

    # ---- call 1: relu(bn1(x)) -> SubMConv3(k3, w1) -> relu(bn2(.)) ----------
    # BN1+ReLU on the un-expanded [C, M] tensor BEFORE im2col; BN2+ReLU is the
    # fused kernel epilogue.
    a_rows, w_cols = [], []
    for x_p, pp in zip(xs, p["parts"]):
        cin = x_p.shape[0]
        xa = bn_relu_T(x_p, pp["bn1_scale"], pp["bn1_bias"])      # [cin, M] bf16
        a_rows.append(im2col_k3_T(xa.reshape(cin, D, H, W)))      # [27*cin, M]
        w_cols.append(pp["w1T"])                                  # [cout, 27*cin]
    a1 = a_rows[0] if len(a_rows) == 1 else jnp.concatenate(a_rows, axis=0)
    w1 = w_cols[0] if len(w_cols) == 1 else jnp.concatenate(w_cols, axis=1)
    a2 = fused_op(a1, w1, epilogue=(p["bn2_scale"], p["bn2_bias"]))  # [cout, M]

    # ---- call 2: SubMConv3(k3, w2) + i_branch (1x1 conv or identity) --------
    a2_cols = im2col_k3_T(a2.reshape(cout, D, H, W))              # [27*cout, M]
    if "iwT" in p["parts"][0]:
        # 1x1 i_branch folded into the same matmul as extra K rows.
        a = jnp.concatenate([a2_cols] + list(xs), axis=0)
        w = jnp.concatenate([p["w2T"]] + [pp["iwT"] for pp in p["parts"]], axis=1)
        return fused_op(a, w)
    return fused_op(a2_cols, p["w2T"], residual=xs[0])


def ublock_forward_T(x, spatial, params):
    """x: [nPlanes[0], M] bf16 -> [nPlanes[0], M] bf16."""
    D, H, W = spatial
    for bp in params["blocks"]:
        x = residual_block_T([x], spatial, bp)

    if "u" in params:
        identity = x
        c0 = x.shape[0]

        # self.conv: BN -> ReLU -> SparseConv3d(k=2, s=2)  (BN+ReLU pre-gather)
        xa = bn_relu_T(x, params["conv_bn_scale"], params["conv_bn_bias"])
        a = im2col_k2s2_T(xa.reshape(c0, D, H, W))                 # [8*c0, M/8]
        h = fused_op(a, params["conv_wT"])                         # [c1, M/8]

        # self.u: recurse
        sub = (D // 2, H // 2, W // 2)
        h = ublock_forward_T(h, sub, params["u"])

        # self.deconv: BN -> ReLU -> SparseInverseConv3d(k=2)
        ha = bn_relu_T(h, params["deconv_bn_scale"], params["deconv_bn_bias"])
        g_cols = fused_op(ha, params["deconv_wT"])                 # [8*c0, M/8]
        g = col2vox_k2s2_T(g_cols, c0, *sub).reshape(c0, D * H * W)

        # blocks_tail: first block consumes (identity, decoder) as split-K
        # parts inside its fused calls -> no channel concat is materialized.
        x = residual_block_T([identity, g], spatial, params["blocks_tail"][0])
        for bp in params["blocks_tail"][1:]:
            x = residual_block_T([x], spatial, bp)
    return x


# ----------------------------------------------------------------------------
# Deterministic parameter construction (synthetic init, no checkpoints)
# ----------------------------------------------------------------------------
def _bn_fold(c):
    """Eval-mode BatchNorm1d(eps=1e-4), PyTorch default init, folded to
    a per-channel (scale, bias) pair."""
    gamma = jnp.ones((c,), jnp.float32)
    beta = jnp.zeros((c,), jnp.float32)
    mean = jnp.zeros((c,), jnp.float32)
    var = jnp.ones((c,), jnp.float32)
    scale = gamma / jnp.sqrt(var + BN_EPS)
    bias = beta - mean * scale
    return scale, bias


def _conv_w_T(key, taps, cin, cout):
    """k-tap conv weight, stored transposed [cout, taps*cin] in bf16."""
    w = jax.random.normal(key, (taps, cin, cout), jnp.float32)
    w = w / jnp.sqrt(jnp.float32(taps * cin))
    return jnp.transpose(w, (2, 0, 1)).reshape(cout, taps * cin).astype(jnp.bfloat16)


def _dense_w_T(key, cin, cout):
    w = jax.random.normal(key, (cin, cout), jnp.float32) / jnp.sqrt(jnp.float32(cin))
    return w.T.astype(jnp.bfloat16)


def _deconv_w_T(key, c1, c0):
    """Inverse conv k=2: [8*c0, c1] bf16 (row = tap*c0 + c)."""
    w = jax.random.normal(key, (8 * c0, c1), jnp.float32) / jnp.sqrt(jnp.float32(c1))
    return w.astype(jnp.bfloat16)


def _resblock_params(key, cins, cout):
    n = len(cins)
    keys = jax.random.split(key, 2 * n + 1)
    identity = (n == 1) and (cins[0] == cout)
    parts = []
    for idx, cin in enumerate(cins):
        s1, b1 = _bn_fold(cin)
        part = {"bn1_scale": s1, "bn1_bias": b1,
                "w1T": _conv_w_T(keys[2 * idx], 27, cin, cout)}
        if not identity:
            part["iwT"] = _dense_w_T(keys[2 * idx + 1], cin, cout)
        parts.append(part)
    s2, b2 = _bn_fold(cout)
    return {"parts": parts, "bn2_scale": s2, "bn2_bias": b2,
            "w2T": _conv_w_T(keys[-1], 27, cout, cout)}


def make_ublock_params(key, nPlanes, block_reps):
    keys = jax.random.split(key, 2 * block_reps + 4)
    c0 = nPlanes[0]
    p = {"blocks": [_resblock_params(keys[i], [c0], c0)
                    for i in range(block_reps)]}
    if len(nPlanes) > 1:
        c1 = nPlanes[1]
        p["conv_bn_scale"], p["conv_bn_bias"] = _bn_fold(c0)
        p["conv_wT"] = _conv_w_T(keys[block_reps], 8, c0, c1)
        p["u"] = make_ublock_params(keys[block_reps + 1], nPlanes[1:], block_reps)
        p["deconv_bn_scale"], p["deconv_bn_bias"] = _bn_fold(c1)
        p["deconv_wT"] = _deconv_w_T(keys[block_reps + 2], c1, c0)
        p["blocks_tail"] = [
            _resblock_params(keys[block_reps + 3 + i],
                             [c0, c0] if i == 0 else [c0], c0)
            for i in range(block_reps)]
    return p


# ----------------------------------------------------------------------------
if __name__ == "__main__":
    key = jax.random.PRNGKey(0)
    kx, kp = jax.random.split(key)

    nPlanes = [8, 16, 32]   # 3-level U-block (recursion depth 3)
    block_reps = 2
    D = H = W = 8           # spatial 8 -> 4 -> 2 down the U; M = 512 -> 64 -> 8

    x_vox = jax.random.normal(kx, (D, H, W, nPlanes[0]), jnp.float32)
    params = make_ublock_params(kp, nPlanes, block_reps)

    @functools.partial(jax.jit, static_argnames=("spatial",))
    def forward(x, params, spatial):
        d, h, w = spatial
        c = x.shape[-1]
        xt = x.reshape(d * h * w, c).T.astype(jnp.bfloat16)   # [C, M], M on lanes
        out = ublock_forward_T(xt, spatial, params)           # bf16 [C, M]
        return out.T.astype(jnp.float32).reshape(d, h, w, c)

    out = forward(x_vox, params, (D, H, W))
    out = jax.block_until_ready(out)

    assert out.shape == (D, H, W, nPlanes[0]), out.shape
    assert out.dtype == jnp.float32
    assert bool(jnp.all(jnp.isfinite(out)))
    print("KERNEL_OK")
</pallas_src>

<mosaic_0001>
module attributes {stable_mosaic.version = 11 : i64} {
  func.func @kernel(%arg0: i32, %arg1: memref<224x256xbf16, #tpu.memory_space<vmem>>, %arg2: memref<8x224xbf16, #tpu.memory_space<vmem>>, %arg3: memref<8x2xf32, #tpu.memory_space<vmem>>, %arg4: memref<8x256xbf16, #tpu.memory_space<vmem>>) attributes {dimension_semantics = [#tpu.dimension_semantics<parallel>], iteration_bounds = array<i64: 2>, scalar_prefetch = 0 : i64, scratch_operands = 0 : i64, tpu.core_type = #tpu.core_type<tc>, window_params = [{transform_indices = @transform_0, window_bounds = array<i64: 224, 256>}, {pipeline_mode = #tpu.pipeline_mode<synchronous>, transform_indices = @transform_1, window_bounds = array<i64: 8, 224>}, {pipeline_mode = #tpu.pipeline_mode<synchronous>, transform_indices = @transform_2, window_bounds = array<i64: 8, 2>}, {transform_indices = @transform_3, window_bounds = array<i64: 8, 256>}]} {
    %c0 = arith.constant 0 : index
    %c0_0 = arith.constant 0 : index
    %0 = vector.load %arg1[%c0, %c0_0] : memref<224x256xbf16, #tpu.memory_space<vmem>>, vector<224x256xbf16>
    %c0_1 = arith.constant 0 : index
    %c0_2 = arith.constant 0 : index
    %1 = vector.load %arg2[%c0_1, %c0_2] : memref<8x224xbf16, #tpu.memory_space<vmem>>, vector<8x224xbf16>
    %cst = arith.constant dense<0.000000e+00> : vector<8x256xf32>
    %2 = tpu.matmul %1, %0, %cst {dimension_numbers = #tpu.dot_dimension_numbers<[1], [0], [0], [1], [0, 0, 1, 1], [], []>} : vector<8x224xbf16>, vector<224x256xbf16>, vector<8x256xf32> -> vector<8x256xf32>
    %c0_3 = arith.constant 0 : index
    %c0_4 = arith.constant 0 : index
    %3 = vector.load %arg3[%c0_3, %c0_4] : memref<8x2xf32, #tpu.memory_space<vmem>>, vector<8x2xf32>
    %4 = vector.extract_strided_slice %3 {offsets = [0, 0], sizes = [8, 1], strides = [1, 1]} : vector<8x2xf32> to vector<8x1xf32>
    %5 = vector.broadcast %4 : vector<8x1xf32> to vector<8x256xf32>
    %6 = arith.mulf %2, %5 : vector<8x256xf32>
    %7 = vector.extract_strided_slice %3 {offsets = [0, 1], sizes = [8, 1], strides = [1, 1]} : vector<8x2xf32> to vector<8x1xf32>
    %8 = vector.broadcast %7 : vector<8x1xf32> to vector<8x256xf32>
    %9 = arith.addf %6, %8 : vector<8x256xf32>
    %cst_5 = arith.constant 0.000000e+00 : f32
    %10 = vector.broadcast %cst_5 : f32 to vector<8x256xf32>
    %11 = arith.maximumf %9, %10 : vector<8x256xf32>
    %12 = arith.truncf %11 : vector<8x256xf32> to vector<8x256xbf16>
    %c0_6 = arith.constant 0 : index
    %c0_7 = arith.constant 0 : index
    %13 = vector.load %arg4[%c0_6, %c0_7] : memref<8x256xbf16, #tpu.memory_space<vmem>>, vector<8x256xbf16>
    tpu.vector_store %arg4[%c0_6, %c0_7], %12 {strides = array<i32>} : memref<8x256xbf16, #tpu.memory_space<vmem>>, vector<8x256xbf16>,
    return
  }
  func.func @transform_0(%arg0: i32) -> (i32, i32) {
    %c0_i32 = arith.constant 0 : i32
    %c0_i32_0 = arith.constant 0 : i32
    return %c0_i32, %arg0 : i32, i32
  }
  func.func @transform_1(%arg0: i32) -> (i32, i32) {
    %c0_i32 = arith.constant 0 : i32
    %c0_i32_0 = arith.constant 0 : i32
    %c0_i32_1 = arith.constant 0 : i32
    return %c0_i32, %c0_i32_0 : i32, i32
  }
  func.func @transform_2(%arg0: i32) -> (i32, i32) {
    %c0_i32 = arith.constant 0 : i32
    %c0_i32_0 = arith.constant 0 : i32
    %c0_i32_1 = arith.constant 0 : i32
    return %c0_i32, %c0_i32_0 : i32, i32
  }
  func.func @transform_3(%arg0: i32) -> (i32, i32) {
    %c0_i32 = arith.constant 0 : i32
    %c0_i32_0 = arith.constant 0 : i32
    return %c0_i32, %arg0 : i32, i32
  }
}

module attributes {stable_mosaic.version = 11 : i64} {
  func.func @kernel(%arg0: i32, %arg1: memref<224x256xbf16, #tpu.memory_space<vmem>>, %arg2: memref<8x224xbf16, #tpu.memory_space<vmem>>, %arg3: memref<8x256xbf16, #tpu.memory_space<vmem>>, %arg4: memref<8x256xbf16, #tpu.memory_space<vmem>>) attributes {dimension_semantics = [#tpu.dimension_semantics<parallel>], iteration_bounds = array<i64: 2>, scalar_prefetch = 0 : i64, scratch_operands = 0 : i64, tpu.core_type = #tpu.core_type<tc>, window_params = [{transform_indices = @transform_0, window_bounds = array<i64: 224, 256>}, {pipeline_mode = #tpu.pipeline_mode<synchronous>, transform_indices = @transform_1, window_bounds = array<i64: 8, 224>}, {transform_indices = @transform_2, window_bounds = array<i64: 8, 256>}, {transform_indices = @transform_3, window_bounds = array<i64: 8, 256>}]} {
    %c0 = arith.constant 0 : index
    %c0_0 = arith.constant 0 : index
    %0 = vector.load %arg1[%c0, %c0_0] : memref<224x256xbf16, #tpu.memory_space<vmem>>, vector<224x256xbf16>
    %c0_1 = arith.constant 0 : index
    %c0_2 = arith.constant 0 : index
    %1 = vector.load %arg2[%c0_1, %c0_2] : memref<8x224xbf16, #tpu.memory_space<vmem>>, vector<8x224xbf16>
    %cst = arith.constant dense<0.000000e+00> : vector<8x256xf32>
    %2 = tpu.matmul %1, %0, %cst {dimension_numbers = #tpu.dot_dimension_numbers<[1], [0], [0], [1], [0, 0, 1, 1], [], []>} : vector<8x224xbf16>, vector<224x256xbf16>, vector<8x256xf32> -> vector<8x256xf32>
    %c0_3 = arith.constant 0 : index
    %c0_4 = arith.constant 0 : index
    %3 = vector.load %arg3[%c0_3, %c0_4] : memref<8x256xbf16, #tpu.memory_space<vmem>>, vector<8x256xbf16>
    %4 = arith.extf %3 : vector<8x256xbf16> to vector<8x256xf32>
    %5 = arith.addf %2, %4 : vector<8x256xf32>
    %6 = arith.truncf %5 : vector<8x256xf32> to vector<8x256xbf16>
    %c0_5 = arith.constant 0 : index
    %c0_6 = arith.constant 0 : index
    %7 = vector.load %arg4[%c0_5, %c0_6] : memref<8x256xbf16, #tpu.memory_space<vmem>>, vector<8x256xbf16>
    tpu.vector_store %arg4[%c0_5, %c0_6], %6 {strides = array<i32>} : memref<8x256xbf16, #tpu.memory_space<vmem>>, vector<8x256xbf16>,
    return
  }
  func.func @transform_0(%arg0: i32) -> (i32, i32) {
    %c0_i32 = arith.constant 0 : i32
    %c0_i32_0 = arith.constant 0 : i32
    return %c0_i32, %arg0 : i32, i32
  }
  func.func @transform_1(%arg0: i32) -> (i32, i32) {
    %c0_i32 = arith.constant 0 : i32
    %c0_i32_0 = arith.constant 0 : i32
    %c0_i32_1 = arith.constant 0 : i32
    return %c0_i32, %c0_i32_0 : i32, i32
  }
  func.func @transform_2(%arg0: i32) -> (i32, i32) {
    %c0_i32 = arith.constant 0 : i32
    %c0_i32_0 = arith.constant 0 : i32
    return %c0_i32, %arg0 : i32, i32
  }
  func.func @transform_3(%arg0: i32) -> (i32, i32) {
    %c0_i32 = arith.constant 0 : i32
    %c0_i32_0 = arith.constant 0 : i32
    return %c0_i32, %arg0 : i32, i32
  }
}

module attributes {stable_mosaic.version = 11 : i64} {
  func.func @kernel(%arg0: i32, %arg1: memref<432x256xbf16, #tpu.memory_space<vmem>>, %arg2: memref<8x432xbf16, #tpu.memory_space<vmem>>, %arg3: memref<8x2xf32, #tpu.memory_space<vmem>>, %arg4: memref<8x256xbf16, #tpu.memory_space<vmem>>) attributes {dimension_semantics = [#tpu.dimension_semantics<parallel>], iteration_bounds = array<i64: 2>, scalar_prefetch = 0 : i64, scratch_operands = 0 : i64, tpu.core_type = #tpu.core_type<tc>, window_params = [{transform_indices = @transform_0, window_bounds = array<i64: 432, 256>}, {pipeline_mode = #tpu.pipeline_mode<synchronous>, transform_indices = @transform_1, window_bounds = array<i64: 8, 432>}, {pipeline_mode = #tpu.pipeline_mode<synchronous>, transform_indices = @transform_2, window_bounds = array<i64: 8, 2>}, {transform_indices = @transform_3, window_bounds = array<i64: 8, 256>}]} {
    %c0 = arith.constant 0 : index
    %c0_0 = arith.constant 0 : index
    %0 = vector.load %arg1[%c0, %c0_0] : memref<432x256xbf16, #tpu.memory_space<vmem>>, vector<432x256xbf16>
    %c0_1 = arith.constant 0 : index
    %c0_2 = arith.constant 0 : index
    %1 = vector.load %arg2[%c0_1, %c0_2] : memref<8x432xbf16, #tpu.memory_space<vmem>>, vector<8x432xbf16>
    %cst = arith.constant dense<0.000000e+00> : vector<8x256xf32>
    %2 = tpu.matmul %1, %0, %cst {dimension_numbers = #tpu.dot_dimension_numbers<[1], [0], [0], [1], [0, 0, 1, 1], [], []>} : vector<8x432xbf16>, vector<432x256xbf16>, vector<8x256xf32> -> vector<8x256xf32>
    %c0_3 = arith.constant 0 : index
    %c0_4 = arith.constant 0 : index
    %3 = vector.load %arg3[%c0_3, %c0_4] : memref<8x2xf32, #tpu.memory_space<vmem>>, vector<8x2xf32>
    %4 = vector.extract_strided_slice %3 {offsets = [0, 0], sizes = [8, 1], strides = [1, 1]} : vector<8x2xf32> to vector<8x1xf32>
    %5 = vector.broadcast %4 : vector<8x1xf32> to vector<8x256xf32>
    %6 = arith.mulf %2, %5 : vector<8x256xf32>
    %7 = vector.extract_strided_slice %3 {offsets = [0, 1], sizes = [8, 1], strides = [1, 1]} : vector<8x2xf32> to vector<8x1xf32>
    %8 = vector.broadcast %7 : vector<8x1xf32> to vector<8x256xf32>
    %9 = arith.addf %6, %8 : vector<8x256xf32>
    %cst_5 = arith.constant 0.000000e+00 : f32
    %10 = vector.broadcast %cst_5 : f32 to vector<8x256xf32>
    %11 = arith.maximumf %9, %10 : vector<8x256xf32>
    %12 = arith.truncf %11 : vector<8x256xf32> to vector<8x256xbf16>
    %c0_6 = arith.constant 0 : index
    %c0_7 = arith.constant 0 : index
    %13 = vector.load %arg4[%c0_6, %c0_7] : memref<8x256xbf16, #tpu.memory_space<vmem>>, vector<8x256xbf16>
    tpu.vector_store %arg4[%c0_6, %c0_7], %12 {strides = array<i32>} : memref<8x256xbf16, #tpu.memory_space<vmem>>, vector<8x256xbf16>,
    return
  }
  func.func @transform_0(%arg0: i32) -> (i32, i32) {
    %c0_i32 = arith.constant 0 : i32
    %c0_i32_0 = arith.constant 0 : i32
    return %c0_i32, %arg0 : i32, i32
  }
  func.func @transform_1(%arg0: i32) -> (i32, i32) {
    %c0_i32 = arith.constant 0 : i32
    %c0_i32_0 = arith.constant 0 : i32
    %c0_i32_1 = arith.constant 0 : i32
    return %c0_i32, %c0_i32_0 : i32, i32
  }
  func.func @transform_2(%arg0: i32) -> (i32, i32) {
    %c0_i32 = arith.constant 0 : i32
    %c0_i32_0 = arith.constant 0 : i32
    %c0_i32_1 = arith.constant 0 : i32
    return %c0_i32, %c0_i32_0 : i32, i32
  }
  func.func @transform_3(%arg0: i32) -> (i32, i32) {
    %c0_i32 = arith.constant 0 : i32
    %c0_i32_0 = arith.constant 0 : i32
    return %c0_i32, %arg0 : i32, i32
  }
}

module attributes {stable_mosaic.version = 11 : i64} {
  func.func @kernel(%arg0: i32, %arg1: memref<240x256xbf16, #tpu.memory_space<vmem>>, %arg2: memref<8x240xbf16, #tpu.memory_space<vmem>>, %arg3: memref<8x256xbf16, #tpu.memory_space<vmem>>) attributes {dimension_semantics = [#tpu.dimension_semantics<parallel>], iteration_bounds = array<i64: 2>, scalar_prefetch = 0 : i64, scratch_operands = 0 : i64, tpu.core_type = #tpu.core_type<tc>, window_params = [{transform_indices = @transform_0, window_bounds = array<i64: 240, 256>}, {pipeline_mode = #tpu.pipeline_mode<synchronous>, transform_indices = @transform_1, window_bounds = array<i64: 8, 240>}, {transform_indices = @transform_2, window_bounds = array<i64: 8, 256>}]} {
    %c0 = arith.constant 0 : index
    %c0_0 = arith.constant 0 : index
    %0 = vector.load %arg1[%c0, %c0_0] : memref<240x256xbf16, #tpu.memory_space<vmem>>, vector<240x256xbf16>
    %c0_1 = arith.constant 0 : index
    %c0_2 = arith.constant 0 : index
    %1 = vector.load %arg2[%c0_1, %c0_2] : memref<8x240xbf16, #tpu.memory_space<vmem>>, vector<8x240xbf16>
    %cst = arith.constant dense<0.000000e+00> : vector<8x256xf32>
    %2 = tpu.matmul %1, %0, %cst {dimension_numbers = #tpu.dot_dimension_numbers<[1], [0], [0], [1], [0, 0, 1, 1], [], []>} : vector<8x240xbf16>, vector<240x256xbf16>, vector<8x256xf32> -> vector<8x256xf32>
    %3 = arith.truncf %2 : vector<8x256xf32> to vector<8x256xbf16>
    %c0_3 = arith.constant 0 : index
    %c0_4 = arith.constant 0 : index
    %4 = vector.load %arg3[%c0_3, %c0_4] : memref<8x256xbf16, #tpu.memory_space<vmem>>, vector<8x256xbf16>
    tpu.vector_store %arg3[%c0_3, %c0_4], %3 {strides = array<i32>} : memref<8x256xbf16, #tpu.memory_space<vmem>>, vector<8x256xbf16>,
    return
  }
  func.func @transform_0(%arg0: i32) -> (i32, i32) {
    %c0_i32 = arith.constant 0 : i32
    %c0_i32_0 = arith.constant 0 : i32
    return %c0_i32, %arg0 : i32, i32
  }
  func.func @transform_1(%arg0: i32) -> (i32, i32) {
    %c0_i32 = arith.constant 0 : i32
    %c0_i32_0 = arith.constant 0 : i32
    %c0_i32_1 = arith.constant 0 : i32
    return %c0_i32, %c0_i32_0 : i32, i32
  }
  func.func @transform_2(%arg0: i32) -> (i32, i32) {
    %c0_i32 = arith.constant 0 : i32
    %c0_i32_0 = arith.constant 0 : i32
    return %c0_i32, %arg0 : i32, i32
  }
}

</mosaic_0001>

<bundles_post_ra>
// kernel: forward.8
= control target key start
LH: loop header
LB: loop body
LE: loop exit
PB: predicated region body
PF: predicated region fallthrough
CT: control target
= control target key end

     0   :  { %s789_s12 = smov 0   ;;  %s791_s13 = smov 0   ;;  %s943_s0 = inlined_call_operand.vmem [shape: bf16[224,512], index: 0, kind: input, shape index: {}]   ;;  %s944_s1 = inlined_call_operand.vmem [shape: bf16[8,224], index: 1, kind: input, shape index: {}]   ;;  %s945_s2 = inlined_call_operand.vmem [shape: f32[8,2], index: 2, kind: input, shape index: {}]   ;;  %s946_s3 = inlined_call_operand.vmem [shape: bf16[8,512], index: 3, kind: output, shape index: {}]  }
   0x1   :  { %s793_s14 = smov 0  }
   0x2 LB: > { %s624_s15 = sadd.s32 4294967295, %s765_s14   ;;  %s806_s16 = sadd.s32 1, %s765_s14   ;;  %s765_s14 = sphi %s793_s14, %s949_s14   ;;  %s761_s13 = sphi %s791_s13, %s948_s13   ;;  %s757_s12 = sphi %s789_s12, %s947_s12  }
   0x3   : > { %s17_s17 = ssub.s32 %s765_s14, %s806_s16  ;;  %s20_s18 = sadd.s32 1, %s761_s13 }
   0x4   : > { %p18_p0 = scmp.eq.s32.totalorder %s17_s17, 0  ;;  %p27_p1 = scmp.ne.s32.totalorder %s761_s13, %s757_s12 }
   0x5   : > { %p28_p2 = scmp.eq.s32.totalorder %s765_s14, 0  ;;  %p627_p4 = scmp.ge.s32.totalorder %s765_s14, 2 }
   0x6   : > { %s815_s19 = scalar_select %p18_p0, %s761_s13, %s20_s18  }
   0x7   : > { %p29_p3 = por %p28_p2, %p27_p1  ;;  %127 = sbr.rel (%p627_p4) target bundleno = 32 (0x20), region = 24 }
   0xe   : > { %130 = sbr.rel (!%p29_p3) target bundleno = 32 (0x20), region = 28  ;;  %s132_s20 = sand.u32 (%p29_p3), 1, %s761_s13  }
   0xf   : > { %s667_s21 = sshll.u32 (%p29_p3), %s765_s14, 3  ;;  %s669_s22 = smul.u32 (%p29_p3), 224, %s132_s20 }
  0x10   : > { %s823_s25 = scalar_lea.vmem (%p29_p3), %s943_s0, %s667_s21 }
  0x11   : > { %v219_v0 = vld [vmem:[%s823_s25] sm:$0xff] (%p29_p3)  ;;  %v221_v1 = vld [vmem:[%s823_s25 + $0x10] sm:$0xff] (%p29_p3)  ;;  %s831_s26 = scalar_lea.vmem (%p29_p3), [#allocation2], %s669_s22 }
  0x12   : > { %v223_v2 = vld [vmem:[%s823_s25 + $0x20] sm:$0xff] (%p29_p3)  ;;  %v225_v3 = vld [vmem:[%s823_s25 + $0x30] sm:$0xff] (%p29_p3)  ;;  %220 = vst [vmem:[%s831_s26] sm:$0xff] (%p29_p3), %v219_v0  ;;  %222 = vst [vmem:[%s831_s26 + $0x8] sm:$0xff] (%p29_p3), %v221_v1 }
  0x13   : > { %v227_v4 = vld [vmem:[%s823_s25 + $0x40] sm:$0xff] (%p29_p3)  ;;  %v229_v5 = vld [vmem:[%s823_s25 + $0x50] sm:$0xff] (%p29_p3)  ;;  %224 = vst [vmem:[%s831_s26 + $0x10] sm:$0xff] (%p29_p3), %v223_v2  ;;  %226 = vst [vmem:[%s831_s26 + $0x18] sm:$0xff] (%p29_p3), %v225_v3 }
  0x14   : > { %228 = vst [vmem:[%s831_s26 + $0x20] sm:$0xff] (%p29_p3), %v227_v4  ;;  %230 = vst [vmem:[%s831_s26 + $0x28] sm:$0xff] (%p29_p3), %v229_v5  ;;  %v231_v6 = vld [vmem:[%s823_s25 + $0x60] sm:$0xff] (%p29_p3)  ;;  %v233_v7 = vld [vmem:[%s823_s25 + $0x70] sm:$0xff] (%p29_p3) }
  0x15   : > { %v235_v8 = vld [vmem:[%s823_s25 + $0x80] sm:$0xff]  ;;  %232 = vst [vmem:[%s831_s26 + $0x30] sm:$0xff] %v231_v6  ;;  %234 = vst [vmem:[%s831_s26 + $0x38] sm:$0xff] %v233_v7  ;;  %v237_v9 = vld [vmem:[%s823_s25 + $0x90] sm:$0xff] }
  0x16   : > { %236 = vst [vmem:[%s831_s26 + $0x40] sm:$0xff] %v235_v8  ;;  %v239_v10 = vld [vmem:[%s823_s25 + $0xa0] sm:$0xff]  ;;  %v241_v11 = vld [vmem:[%s823_s25 + $0xb0] sm:$0xff]  ;;  %238 = vst [vmem:[%s831_s26 + $0x48] sm:$0xff] %v237_v9 }
  0x17   : > { %240 = vst [vmem:[%s831_s26 + $0x50] sm:$0xff] %v239_v10  ;;  %242 = vst [vmem:[%s831_s26 + $0x58] sm:$0xff] %v241_v11  ;;  %v243_v12 = vld [vmem:[%s823_s25 + $0xc0] sm:$0xff]  ;;  %v245_v13 = vld [vmem:[%s823_s25 + $0xd0] sm:$0xff] }
  0x18   : > { %v247_v14 = vld [vmem:[%s823_s25 + $0xe0] sm:$0xff]  ;;  %244 = vst [vmem:[%s831_s26 + $0x60] sm:$0xff] %v243_v12  ;;  %246 = vst [vmem:[%s831_s26 + $0x68] sm:$0xff] %v245_v13  ;;  %v249_v15 = vld [vmem:[%s823_s25 + $0xf0] sm:$0xff] }
  0x19   : > { %248 = vst [vmem:[%s831_s26 + $0x70] sm:$0xff] %v247_v14  ;;  %v251_v16 = vld [vmem:[%s823_s25 + $0x100] sm:$0xff]  ;;  %v253_v17 = vld [vmem:[%s823_s25 + $0x110] sm:$0xff]  ;;  %250 = vst [vmem:[%s831_s26 + $0x78] sm:$0xff] %v249_v15 }
  0x1a   : > { %252 = vst [vmem:[%s831_s26 + $0x80] sm:$0xff] %v251_v16  ;;  %254 = vst [vmem:[%s831_s26 + $0x88] sm:$0xff] %v253_v17  ;;  %v255_v18 = vld [vmem:[%s823_s25 + $0x120] sm:$0xff]  ;;  %v257_v19 = vld [vmem:[%s823_s25 + $0x130] sm:$0xff] }
  0x1b   : > { %v259_v20 = vld [vmem:[%s823_s25 + $0x140] sm:$0xff]  ;;  %256 = vst [vmem:[%s831_s26 + $0x90] sm:$0xff] %v255_v18  ;;  %258 = vst [vmem:[%s831_s26 + $0x98] sm:$0xff] %v257_v19  ;;  %v261_v21 = vld [vmem:[%s823_s25 + $0x150] sm:$0xff] }
  0x1c   : > { %260 = vst [vmem:[%s831_s26 + $0xa0] sm:$0xff] %v259_v20  ;;  %v263_v22 = vld [vmem:[%s823_s25 + $0x160] sm:$0xff]  ;;  %v265_v23 = vld [vmem:[%s823_s25 + $0x170] sm:$0xff]  ;;  %262 = vst [vmem:[%s831_s26 + $0xa8] sm:$0xff] %v261_v21 }
  0x1d   : > { %264 = vst [vmem:[%s831_s26 + $0xb0] sm:$0xff] %v263_v22  ;;  %266 = vst [vmem:[%s831_s26 + $0xb8] sm:$0xff] %v265_v23  ;;  %v267_v24 = vld [vmem:[%s823_s25 + $0x180] sm:$0xff]  ;;  %v269_v25 = vld [vmem:[%s823_s25 + $0x190] sm:$0xff] }
  0x1e   : > { %v271_v26 = vld [vmem:[%s823_s25 + $0x1a0] sm:$0xff]  ;;  %268 = vst [vmem:[%s831_s26 + $0xc0] sm:$0xff] %v267_v24  ;;  %270 = vst [vmem:[%s831_s26 + $0xc8] sm:$0xff] %v269_v25  ;;  %v273_v27 = vld [vmem:[%s823_s25 + $0x1b0] sm:$0xff] }
  0x1f   : > { %272 = vst [vmem:[%s831_s26 + $0xd0] sm:$0xff] %v271_v26  ;;  %274 = vst [vmem:[%s831_s26 + $0xd8] sm:$0xff] %v273_v27 }
  0x20 PF: > { %p630_p5 = scmp.ge.s32.totalorder %s765_s14, 1  ;;  %p279_p6 = scmp.lt.s32.totalorder %s765_s14, 3 }
  0x22   : > { %p280_p7 = pnand %p630_p5, %p279_p6 }
  0x23   : > { %s286_s27 = sand.u32 (!%p280_p7), 1, %s757_s12   ;;  %v889_v28 = vld [vmem:[%s944_s1] sm:$0xff] (!%p280_p7)  ;;  %vm492_vm0 = vcmask (!%p280_p7), 785408   ;;  %v767_v31 = vmov (!%p280_p7), 0   ;;  %v768_v35 = vmov (!%p280_p7), 1   ;;  %s631_s7 = sshll.u32 (!%p280_p7), %s624_s15, 1 }
  0x24   : > { %283 = sbr.rel (%p280_p7) target bundleno = 319 (0x13f), region = 66  ;;  %v537_v29 = vld [vmem:[%s945_s2] sm:$0xff] (!%p280_p7)  ;;  %v634_v30 = vcombine.high (!%p280_p7), %v889_v28, %v889_v28  ;;  %697 = vset.pattern.permute.xlu0 (!%p280_p7), %v767_v31  ;;  %v633_v61 = vcombine.low (!%p280_p7), %v889_v28, %v889_v28  ;;  %p311_p8 = scmp.lt.s32.totalorder (!%p280_p7), %s631_s7, 3 }
  0x25   : > { %s670_s5 = smul.u32 (!%p280_p7), 224, %s286_s27  ;;  %540 = vperm.xlu0 (!%p280_p7), %697, %v537_v29  }
  0x26   : > { %663 = vmatprep.mubr.msk.bf16.mxu0 (!%p280_p7), %vm492_vm0, %v634_v30 }
  0x27   : > { %s896_s6 = scalar_lea.vmem (!%p280_p7), [#allocation2], %s670_s5 }
  0x28   : > { %v699_v32 = vld [vmem:[%s896_s6 + $0x4] ss:$8 sps:$4 sm:$0xff] (!%p280_p7)   ;;  %v701_v33 = vld [vmem:[%s896_s6] ss:$8 sps:$4 sm:$0xff] (!%p280_p7)   ;;  %v702_v34 = vld [vmem:[%s896_s6 + $0x14] ss:$8 sps:$4 sm:$0xff] (!%p280_p7)  }
  0x29   : > { %496 = vmatprep.subr.bf16.mxu0 (!%p280_p7), %v699_v32  ;;  %698 = vset.pattern.permute.xlu0 (!%p280_p7), %v768_v35  ;;  %v704_v36 = vld [vmem:[%s896_s6 + $0x10] ss:$8 sps:$4 sm:$0xff] (!%p280_p7)   ;;  %v705_v37 = vld [vmem:[%s896_s6 + $0x24] ss:$8 sps:$4 sm:$0xff] (!%p280_p7)   ;;  %v707_v38 = vld [vmem:[%s896_s6 + $0x20] ss:$8 sps:$4 sm:$0xff] (!%p280_p7)  }
  0x2a   : > { %497 = vmatpush1.bf16.msra.mxu0 (!%p280_p7), %v701_v33  ;;  %546 = vperm.xlu0 (!%p280_p7), %698, %v537_v29   ;;  %v708_v39 = vld [vmem:[%s896_s6 + $0x34] ss:$8 sps:$4 sm:$0xff] (!%p280_p7)   ;;  %v710_v40 = vld [vmem:[%s896_s6 + $0x30] ss:$8 sps:$4 sm:$0xff] (!%p280_p7)   ;;  %v711_v41 = vld [vmem:[%s896_s6 + $0x44] ss:$8 sps:$4 sm:$0xff] (!%p280_p7)  }
  0x2b   : > { %498 = vmatprep.subr.bf16.mxu0 %v702_v34  ;;  %v713_v42 = vld [vmem:[%s896_s6 + $0x40] ss:$8 sps:$4 sm:$0xff]   ;;  %v714_v43 = vld [vmem:[%s896_s6 + $0x54] ss:$8 sps:$4 sm:$0xff]   ;;  %v716_v44 = vld [vmem:[%s896_s6 + $0x50] ss:$8 sps:$4 sm:$0xff]  }
  0x2c   : > { %v717_v45 = vld [vmem:[%s896_s6 + $0x64] ss:$8 sps:$4 sm:$0xff]   ;;  %v719_v46 = vld [vmem:[%s896_s6 + $0x60] ss:$8 sps:$4 sm:$0xff]   ;;  %v720_v47 = vld [vmem:[%s896_s6 + $0x74] ss:$8 sps:$4 sm:$0xff]  }
  0x2d   : > { %v722_v48 = vld [vmem:[%s896_s6 + $0x70] ss:$8 sps:$4 sm:$0xff]   ;;  %v723_v49 = vld [vmem:[%s896_s6 + $0x84] ss:$8 sps:$4 sm:$0xff]   ;;  %v725_v50 = vld [vmem:[%s896_s6 + $0x80] ss:$8 sps:$4 sm:$0xff]  }
  0x2e   : > { %499 = vmatpush1.bf16.msra.mxu0 %v704_v36  ;;  %v726_v51 = vld [vmem:[%s896_s6 + $0x94] ss:$8 sps:$4 sm:$0xff]   ;;  %v728_v52 = vld [vmem:[%s896_s6 + $0x90] ss:$8 sps:$4 sm:$0xff]   ;;  %v729_v53 = vld [vmem:[%s896_s6 + $0xa4] ss:$8 sps:$4 sm:$0xff]  }
  0x2f   : > { %500 = vmatprep.subr.bf16.mxu0 %v705_v37  ;;  %v731_v54 = vld [vmem:[%s896_s6 + $0xa0] ss:$8 sps:$4 sm:$0xff]   ;;  %v732_v55 = vld [vmem:[%s896_s6 + $0xb4] ss:$8 sps:$4 sm:$0xff]   ;;  %v734_v56 = vld [vmem:[%s896_s6 + $0xb0] ss:$8 sps:$4 sm:$0xff]  }
  0x30   : > { %v735_v57 = vld [vmem:[%s896_s6 + $0xc4] ss:$8 sps:$4 sm:$0xff]   ;;  %v737_v58 = vld [vmem:[%s896_s6 + $0xc0] ss:$8 sps:$4 sm:$0xff]   ;;  %v738_v59 = vld [vmem:[%s896_s6 + $0xd4] ss:$8 sps:$4 sm:$0xff]  }
  0x31   : > { %v740_v60 = vld [vmem:[%s896_s6 + $0xd0] ss:$8 sps:$4 sm:$0xff]   ;;  %s951_s7 = smov (!%p311_p8, %s631_s7), 3 }
  0x32   : > { %501 = vmatpush1.bf16.msra.mxu0 %v707_v38  ;;  %s632_s8 = sshll.u32 %s951_s7, 2 }
  0x33   : > { %502 = vmatprep.subr.bf16.mxu0 %v708_v39  ;;  %s314_s11 = scalar_lea.vmem %s946_s3, %s632_s8 }
  0x36   : > { %503 = vmatpush1.bf16.msra.mxu0 %v710_v40 }
  0x37   : > { %504 = vmatprep.subr.bf16.mxu0 %v711_v41 }
  0x3a   : > { %505 = vmatpush1.bf16.msra.mxu0 %v713_v42 }
  0x3b   : > { %506 = vmatprep.subr.bf16.mxu0 %v714_v43 }
  0x3e   : > { %507 = vmatpush1.bf16.msra.mxu0 %v716_v44 }
  0x3f   : > { %508 = vmatprep.subr.bf16.mxu0 %v717_v45 }
  0x42   : > { %509 = vmatpush1.bf16.msra.mxu0 %v719_v46 }
  0x43   : > { %510 = vmatprep.subr.bf16.mxu0 %v720_v47 }
  0x46   : > { %511 = vmatpush1.bf16.msra.mxu0 %v722_v48 }
  0x47   : > { %512 = vmatprep.subr.bf16.mxu0 %v723_v49 }
  0x4a   : > { %513 = vmatpush1.bf16.msra.mxu0 %v725_v50 }
  0x4b   : > { %514 = vmatprep.subr.bf16.mxu0 %v726_v51 }
  0x4e   : > { %515 = vmatpush1.bf16.msra.mxu0 %v728_v52 }
  0x4f   : > { %516 = vmatprep.subr.bf16.mxu0 %v729_v53 }
  0x52   : > { %517 = vmatpush1.bf16.msra.mxu0 %v731_v54 }
  0x53   : > { %518 = vmatprep.subr.bf16.mxu0 %v732_v55 }
  0x56   : > { %519 = vmatpush1.bf16.msra.mxu0 %v734_v56 }
  0x57   : > { %520 = vmatprep.subr.bf16.mxu0 %v735_v57 }
  0x5a   : > { %521 = vmatpush1.bf16.msra.mxu0 %v737_v58 }
  0x5b   : > { %522 = vmatprep.subr.bf16.mxu0 %v738_v59 }
  0x5e   : > { %523 = vmatpush1.bf16.msra.mxu0 %v740_v60 }
  0x61   : > { %529 = vmatmul.mubr.bf16.vlgmr.msra.gmra.mrb[0].mxu0 %v633_v61 }
  0xa4   : > { %v541_v62 = vpop.permute.xlu0 %540 }
  0xa9   : > { %v547_v0 = vpop.permute.xlu0 %546 }
 0x134   : > { %v530_v63 = vpop.f32.mrb[0].mxu0 }
 0x135   : > { %v543_v1 = vmul.f32 %v541_v62, %v530_v63  ;;  %v532_v2 = vpop.f32.mrb[1].mxu0 }
 0x136   : > { %v544_v3 = vmul.f32 %v541_v62, %v532_v2  ;;  %v534_v4 = vpop.f32.mrb[2].mxu0 }
 0x137   : > { %v549_v5 = vadd.f32 %v547_v0, %v543_v1  ;;  %v535_v6 = vpop.f32.mrb[3].mxu0 }
 0x138   : > { %v550_v7 = vadd.f32 %v547_v0, %v544_v3 }
 0x139   : > { %v551_v8 = vmax.f32 %v549_v5, 0.0 }
 0x13a   : > { %v552_v9 = vmax.f32 %v550_v7, 0.0 }
 0x13c   : > { %v668_v10 = vpack.c.bf16 %v552_v9, %v551_v8 }
 0x13e   : > { %561 = vst [vmem:[%s314_s11] sm:$0xff] %v668_v10 }
 0x13f PF: > { %p10_p9 = scmp.ge.s32.totalorder %s806_s16, 4   ;;  %s947_s12 = smov %s761_s13 }
 0x140   : > { %s948_s13 = smov %s815_s19  ;;  %s949_s14 = smov %s806_s16 }
 0x141   :  { %12 = sbr.rel (!%p10_p9) target bundleno = 2 (0x2), region = 105 }

// kernel: forward.9
= control target key start
LH: loop header
LB: loop body
LE: loop exit
PB: predicated region body
PF: predicated region fallthrough
CT: control target
= control target key end

     0   :  { %s806_s12 = smov 0   ;;  %s808_s13 = smov 0   ;;  %s960_s0 = inlined_call_operand.vmem [shape: bf16[224,512], index: 0, kind: input, shape index: {}]   ;;  %s961_s1 = inlined_call_operand.vmem [shape: bf16[8,224], index: 1, kind: input, shape index: {}]   ;;  %s962_s2 = inlined_call_operand.vmem [shape: bf16[8,512], index: 2, kind: input, shape index: {}]   ;;  %s963_s3 = inlined_call_operand.vmem [shape: bf16[8,512], index: 3, kind: output, shape index: {}]  }
   0x1   :  { %s810_s14 = smov 0  }
   0x2 LB: > { %s645_s15 = sadd.s32 4294967295, %s784_s14   ;;  %s823_s16 = sadd.s32 1, %s784_s14   ;;  %s784_s14 = sphi %s810_s14, %s966_s14   ;;  %s780_s13 = sphi %s808_s13, %s965_s13   ;;  %s776_s12 = sphi %s806_s12, %s964_s12  }
   0x3   : > { %s17_s17 = ssub.s32 %s784_s14, %s823_s16  ;;  %s20_s18 = sadd.s32 1, %s780_s13 }
   0x4   : > { %p18_p0 = scmp.eq.s32.totalorder %s17_s17, 0  ;;  %p27_p1 = scmp.ne.s32.totalorder %s780_s13, %s776_s12 }
   0x5   : > { %p28_p2 = scmp.eq.s32.totalorder %s784_s14, 0  ;;  %p648_p4 = scmp.ge.s32.totalorder %s784_s14, 2 }
   0x6   : > { %s832_s19 = scalar_select %p18_p0, %s780_s13, %s20_s18  }
   0x7   : > { %p29_p3 = por %p28_p2, %p27_p1  ;;  %129 = sbr.rel (%p648_p4) target bundleno = 32 (0x20), region = 20 }
   0xe   : > { %132 = sbr.rel (!%p29_p3) target bundleno = 32 (0x20), region = 24  ;;  %s134_s20 = sand.u32 (%p29_p3), 1, %s780_s13  }
   0xf   : > { %s690_s21 = sshll.u32 (%p29_p3), %s784_s14, 3  ;;  %s692_s22 = smul.u32 (%p29_p3), 224, %s134_s20 }
  0x10   : > { %s840_s25 = scalar_lea.vmem (%p29_p3), %s960_s0, %s690_s21 }
  0x11   : > { %v221_v0 = vld [vmem:[%s840_s25] sm:$0xff] (%p29_p3)  ;;  %v223_v1 = vld [vmem:[%s840_s25 + $0x10] sm:$0xff] (%p29_p3)  ;;  %s848_s26 = scalar_lea.vmem (%p29_p3), [#allocation2], %s692_s22 }
  0x12   : > { %v225_v2 = vld [vmem:[%s840_s25 + $0x20] sm:$0xff] (%p29_p3)  ;;  %v227_v3 = vld [vmem:[%s840_s25 + $0x30] sm:$0xff] (%p29_p3)  ;;  %222 = vst [vmem:[%s848_s26] sm:$0xff] (%p29_p3), %v221_v0  ;;  %224 = vst [vmem:[%s848_s26 + $0x8] sm:$0xff] (%p29_p3), %v223_v1 }
  0x13   : > { %v229_v4 = vld [vmem:[%s840_s25 + $0x40] sm:$0xff] (%p29_p3)  ;;  %v231_v5 = vld [vmem:[%s840_s25 + $0x50] sm:$0xff] (%p29_p3)  ;;  %226 = vst [vmem:[%s848_s26 + $0x10] sm:$0xff] (%p29_p3), %v225_v2  ;;  %228 = vst [vmem:[%s848_s26 + $0x18] sm:$0xff] (%p29_p3), %v227_v3 }
  0x14   : > { %230 = vst [vmem:[%s848_s26 + $0x20] sm:$0xff] (%p29_p3), %v229_v4  ;;  %232 = vst [vmem:[%s848_s26 + $0x28] sm:$0xff] (%p29_p3), %v231_v5  ;;  %v233_v6 = vld [vmem:[%s840_s25 + $0x60] sm:$0xff] (%p29_p3)  ;;  %v235_v7 = vld [vmem:[%s840_s25 + $0x70] sm:$0xff] (%p29_p3) }
  0x15   : > { %v237_v8 = vld [vmem:[%s840_s25 + $0x80] sm:$0xff]  ;;  %234 = vst [vmem:[%s848_s26 + $0x30] sm:$0xff] %v233_v6  ;;  %236 = vst [vmem:[%s848_s26 + $0x38] sm:$0xff] %v235_v7  ;;  %v239_v9 = vld [vmem:[%s840_s25 + $0x90] sm:$0xff] }
  0x16   : > { %238 = vst [vmem:[%s848_s26 + $0x40] sm:$0xff] %v237_v8  ;;  %v241_v10 = vld [vmem:[%s840_s25 + $0xa0] sm:$0xff]  ;;  %v243_v11 = vld [vmem:[%s840_s25 + $0xb0] sm:$0xff]  ;;  %240 = vst [vmem:[%s848_s26 + $0x48] sm:$0xff] %v239_v9 }
  0x17   : > { %242 = vst [vmem:[%s848_s26 + $0x50] sm:$0xff] %v241_v10  ;;  %244 = vst [vmem:[%s848_s26 + $0x58] sm:$0xff] %v243_v11  ;;  %v245_v12 = vld [vmem:[%s840_s25 + $0xc0] sm:$0xff]  ;;  %v247_v13 = vld [vmem:[%s840_s25 + $0xd0] sm:$0xff] }
  0x18   : > { %v249_v14 = vld [vmem:[%s840_s25 + $0xe0] sm:$0xff]  ;;  %246 = vst [vmem:[%s848_s26 + $0x60] sm:$0xff] %v245_v12  ;;  %248 = vst [vmem:[%s848_s26 + $0x68] sm:$0xff] %v247_v13  ;;  %v251_v15 = vld [vmem:[%s840_s25 + $0xf0] sm:$0xff] }
  0x19   : > { %250 = vst [vmem:[%s848_s26 + $0x70] sm:$0xff] %v249_v14  ;;  %v253_v16 = vld [vmem:[%s840_s25 + $0x100] sm:$0xff]  ;;  %v255_v17 = vld [vmem:[%s840_s25 + $0x110] sm:$0xff]  ;;  %252 = vst [vmem:[%s848_s26 + $0x78] sm:$0xff] %v251_v15 }
  0x1a   : > { %254 = vst [vmem:[%s848_s26 + $0x80] sm:$0xff] %v253_v16  ;;  %256 = vst [vmem:[%s848_s26 + $0x88] sm:$0xff] %v255_v17  ;;  %v257_v18 = vld [vmem:[%s840_s25 + $0x120] sm:$0xff]  ;;  %v259_v19 = vld [vmem:[%s840_s25 + $0x130] sm:$0xff] }
  0x1b   : > { %v261_v20 = vld [vmem:[%s840_s25 + $0x140] sm:$0xff]  ;;  %258 = vst [vmem:[%s848_s26 + $0x90] sm:$0xff] %v257_v18  ;;  %260 = vst [vmem:[%s848_s26 + $0x98] sm:$0xff] %v259_v19  ;;  %v263_v21 = vld [vmem:[%s840_s25 + $0x150] sm:$0xff] }
  0x1c   : > { %262 = vst [vmem:[%s848_s26 + $0xa0] sm:$0xff] %v261_v20  ;;  %v265_v22 = vld [vmem:[%s840_s25 + $0x160] sm:$0xff]  ;;  %v267_v23 = vld [vmem:[%s840_s25 + $0x170] sm:$0xff]  ;;  %264 = vst [vmem:[%s848_s26 + $0xa8] sm:$0xff] %v263_v21 }
  0x1d   : > { %266 = vst [vmem:[%s848_s26 + $0xb0] sm:$0xff] %v265_v22  ;;  %268 = vst [vmem:[%s848_s26 + $0xb8] sm:$0xff] %v267_v23  ;;  %v269_v24 = vld [vmem:[%s840_s25 + $0x180] sm:$0xff]  ;;  %v271_v25 = vld [vmem:[%s840_s25 + $0x190] sm:$0xff] }
  0x1e   : > { %v273_v26 = vld [vmem:[%s840_s25 + $0x1a0] sm:$0xff]  ;;  %270 = vst [vmem:[%s848_s26 + $0xc0] sm:$0xff] %v269_v24  ;;  %272 = vst [vmem:[%s848_s26 + $0xc8] sm:$0xff] %v271_v25  ;;  %v275_v27 = vld [vmem:[%s840_s25 + $0x1b0] sm:$0xff] }
  0x1f   : > { %274 = vst [vmem:[%s848_s26 + $0xd0] sm:$0xff] %v273_v26  ;;  %276 = vst [vmem:[%s848_s26 + $0xd8] sm:$0xff] %v275_v27 }
  0x20 PF: > { %p651_p5 = scmp.ge.s32.totalorder %s784_s14, 1  ;;  %p290_p6 = scmp.lt.s32.totalorder %s784_s14, 3 }
  0x22   : > { %p291_p7 = pnand %p651_p5, %p290_p6 }
  0x23   : > { %s297_s27 = sand.u32 (!%p291_p7), 1, %s776_s12   ;;  %v906_v28 = vld [vmem:[%s961_s1] sm:$0xff] (!%p291_p7)  ;;  %vm517_vm0 = vcmask (!%p291_p7), 785408   ;;  %s652_s5 = sshll.u32 (!%p291_p7), %s645_s15, 1 }
  0x24   : > { %294 = sbr.rel (%p291_p7) target bundleno = 315 (0x13b), region = 66  ;;  %v657_v29 = vcombine.high (!%p291_p7), %v906_v28, %v906_v28  ;;  %v656_v58 = vcombine.low (!%p291_p7), %v906_v28, %v906_v28  ;;  %p327_p8 = scmp.lt.s32.totalorder (!%p291_p7), %s652_s5, 3 }
  0x25   : > { %s693_s30 = smul.u32 (!%p291_p7), 224, %s297_s27 }
  0x26   : > { %686 = vmatprep.mubr.msk.bf16.mxu0 (!%p291_p7), %vm517_vm0, %v657_v29 }
  0x27   : > { %s910_s4 = scalar_lea.vmem (!%p291_p7), [#allocation2], %s693_s30 }
  0x28   : > { %v718_v30 = vld [vmem:[%s910_s4 + $0x4] ss:$8 sps:$4 sm:$0xff] (!%p291_p7)   ;;  %v720_v31 = vld [vmem:[%s910_s4] ss:$8 sps:$4 sm:$0xff] (!%p291_p7)   ;;  %v721_v32 = vld [vmem:[%s910_s4 + $0x14] ss:$8 sps:$4 sm:$0xff] (!%p291_p7)  }
  0x29   : > { %521 = vmatprep.subr.bf16.mxu0 (!%p291_p7), %v718_v30  ;;  %v723_v33 = vld [vmem:[%s910_s4 + $0x10] ss:$8 sps:$4 sm:$0xff] (!%p291_p7)   ;;  %v724_v34 = vld [vmem:[%s910_s4 + $0x24] ss:$8 sps:$4 sm:$0xff] (!%p291_p7)   ;;  %v726_v35 = vld [vmem:[%s910_s4 + $0x20] ss:$8 sps:$4 sm:$0xff] (!%p291_p7)  }
  0x2a   : > { %522 = vmatpush1.bf16.msra.mxu0 (!%p291_p7), %v720_v31  ;;  %v727_v36 = vld [vmem:[%s910_s4 + $0x34] ss:$8 sps:$4 sm:$0xff] (!%p291_p7)   ;;  %v729_v37 = vld [vmem:[%s910_s4 + $0x30] ss:$8 sps:$4 sm:$0xff] (!%p291_p7)   ;;  %v730_v38 = vld [vmem:[%s910_s4 + $0x44] ss:$8 sps:$4 sm:$0xff] (!%p291_p7)  }
  0x2b   : > { %523 = vmatprep.subr.bf16.mxu0 %v721_v32  ;;  %v732_v39 = vld [vmem:[%s910_s4 + $0x40] ss:$8 sps:$4 sm:$0xff]   ;;  %v733_v40 = vld [vmem:[%s910_s4 + $0x54] ss:$8 sps:$4 sm:$0xff]   ;;  %v735_v41 = vld [vmem:[%s910_s4 + $0x50] ss:$8 sps:$4 sm:$0xff]  }
  0x2c   : > { %v736_v42 = vld [vmem:[%s910_s4 + $0x64] ss:$8 sps:$4 sm:$0xff]   ;;  %v738_v43 = vld [vmem:[%s910_s4 + $0x60] ss:$8 sps:$4 sm:$0xff]   ;;  %v739_v44 = vld [vmem:[%s910_s4 + $0x74] ss:$8 sps:$4 sm:$0xff]  }
  0x2d   : > { %v741_v45 = vld [vmem:[%s910_s4 + $0x70] ss:$8 sps:$4 sm:$0xff]   ;;  %v742_v46 = vld [vmem:[%s910_s4 + $0x84] ss:$8 sps:$4 sm:$0xff]   ;;  %v744_v47 = vld [vmem:[%s910_s4 + $0x80] ss:$8 sps:$4 sm:$0xff]  }
  0x2e   : > { %524 = vmatpush1.bf16.msra.mxu0 %v723_v33  ;;  %v745_v48 = vld [vmem:[%s910_s4 + $0x94] ss:$8 sps:$4 sm:$0xff]   ;;  %v747_v49 = vld [vmem:[%s910_s4 + $0x90] ss:$8 sps:$4 sm:$0xff]   ;;  %v748_v50 = vld [vmem:[%s910_s4 + $0xa4] ss:$8 sps:$4 sm:$0xff]  }
  0x2f   : > { %525 = vmatprep.subr.bf16.mxu0 %v724_v34  ;;  %v750_v51 = vld [vmem:[%s910_s4 + $0xa0] ss:$8 sps:$4 sm:$0xff]   ;;  %v751_v52 = vld [vmem:[%s910_s4 + $0xb4] ss:$8 sps:$4 sm:$0xff]   ;;  %v753_v53 = vld [vmem:[%s910_s4 + $0xb0] ss:$8 sps:$4 sm:$0xff]  }
  0x30   : > { %v754_v54 = vld [vmem:[%s910_s4 + $0xc4] ss:$8 sps:$4 sm:$0xff]   ;;  %v756_v55 = vld [vmem:[%s910_s4 + $0xc0] ss:$8 sps:$4 sm:$0xff]   ;;  %v757_v56 = vld [vmem:[%s910_s4 + $0xd4] ss:$8 sps:$4 sm:$0xff]  }
  0x31   : > { %v759_v57 = vld [vmem:[%s910_s4 + $0xd0] ss:$8 sps:$4 sm:$0xff]   ;;  %s968_s5 = smov (!%p327_p8, %s652_s5), 3 }
  0x32   : > { %526 = vmatpush1.bf16.msra.mxu0 %v726_v35  ;;  %s653_s6 = sshll.u32 %s968_s5, 2 }
  0x33   : > { %527 = vmatprep.subr.bf16.mxu0 %v727_v36  ;;  %s330_s9 = scalar_lea.vmem %s962_s2, %s653_s6  ;;  %s336_s12 = scalar_lea.vmem %s963_s3, %s653_s6 }
  0x34   : > { %v368_v59 = vld [vmem:[%s330_s9] sm:$0xff] }
  0x35   : > { %v369_v60 = vunpack.c.l.bf16 %v368_v59  ;;  %v370_v61 = vunpack.c.h.bf16 %v368_v59 }
  0x36   : > { %528 = vmatpush1.bf16.msra.mxu0 %v729_v37 }
  0x37   : > { %529 = vmatprep.subr.bf16.mxu0 %v730_v38 }
  0x3a   : > { %530 = vmatpush1.bf16.msra.mxu0 %v732_v39 }
  0x3b   : > { %531 = vmatprep.subr.bf16.mxu0 %v733_v40 }
  0x3e   : > { %532 = vmatpush1.bf16.msra.mxu0 %v735_v41 }
  0x3f   : > { %533 = vmatprep.subr.bf16.mxu0 %v736_v42 }
  0x42   : > { %534 = vmatpush1.bf16.msra.mxu0 %v738_v43 }
  0x43   : > { %535 = vmatprep.subr.bf16.mxu0 %v739_v44 }
  0x46   : > { %536 = vmatpush1.bf16.msra.mxu0 %v741_v45 }
  0x47   : > { %537 = vmatprep.subr.bf16.mxu0 %v742_v46 }
  0x4a   : > { %538 = vmatpush1.bf16.msra.mxu0 %v744_v47 }
  0x4b   : > { %539 = vmatprep.subr.bf16.mxu0 %v745_v48 }
  0x4e   : > { %540 = vmatpush1.bf16.msra.mxu0 %v747_v49 }
  0x4f   : > { %541 = vmatprep.subr.bf16.mxu0 %v748_v50 }
  0x52   : > { %542 = vmatpush1.bf16.msra.mxu0 %v750_v51 }
  0x53   : > { %543 = vmatprep.subr.bf16.mxu0 %v751_v52 }
  0x56   : > { %544 = vmatpush1.bf16.msra.mxu0 %v753_v53 }
  0x57   : > { %545 = vmatprep.subr.bf16.mxu0 %v754_v54 }
  0x5a   : > { %546 = vmatpush1.bf16.msra.mxu0 %v756_v55 }
  0x5b   : > { %547 = vmatprep.subr.bf16.mxu0 %v757_v56 }
  0x5e   : > { %548 = vmatpush1.bf16.msra.mxu0 %v759_v57 }
  0x61   : > { %554 = vmatmul.mubr.bf16.vlgmr.msra.gmra.mrb[0].mxu0 %v656_v58 }
 0x134   : > { %v555_v62 = vpop.f32.mrb[0].mxu0 }
 0x135   : > { %v556_v63 = vadd.f32 %v555_v62, %v369_v60  ;;  %v557_v0 = vpop.f32.mrb[1].mxu0 }
 0x136   : > { %v558_v1 = vadd.f32 %v557_v0, %v370_v61  ;;  %v559_v2 = vpop.f32.mrb[2].mxu0 }
 0x137   : > { %v560_v3 = vpop.f32.mrb[3].mxu0 }
 0x138   : > { %v691_v4 = vpack.c.bf16 %v558_v1, %v556_v63 }
 0x13a   : > { %570 = vst [vmem:[%s336_s12] sm:$0xff] %v691_v4 }
 0x13b PF: > { %p10_p9 = scmp.ge.s32.totalorder %s823_s16, 4   ;;  %s964_s12 = smov %s780_s13 }
 0x13c   : > { %s965_s13 = smov %s832_s19  ;;  %s966_s14 = smov %s823_s16 }
 0x13d   :  { %12 = sbr.rel (!%p10_p9) target bundleno = 2 (0x2), region = 108 }

// kernel: forward.12
= control target key start
LH: loop header
LB: loop body
LE: loop exit
PB: predicated region body
PF: predicated region fallthrough
CT: control target
= control target key end

     0   :  { %s1169_s12 = smov 0   ;;  %s1171_s13 = smov 0   ;;  %s1410_s0 = inlined_call_operand.vmem [shape: bf16[432,512], index: 0, kind: input, shape index: {}]   ;;  %s1411_s1 = inlined_call_operand.vmem [shape: bf16[8,432], index: 1, kind: input, shape index: {}]   ;;  %s1412_s2 = inlined_call_operand.vmem [shape: f32[8,2], index: 2, kind: input, shape index: {}]   ;;  %s1413_s3 = inlined_call_operand.vmem [shape: bf16[8,512], index: 3, kind: output, shape index: {}]  }
   0x1   :  { %s1173_s14 = smov 0  }
   0x2 LB: > { %s933_s15 = sadd.s32 4294967295, %s1145_s14   ;;  %s1186_s16 = sadd.s32 1, %s1145_s14   ;;  %s1145_s14 = sphi %s1173_s14, %s1416_s14   ;;  %s1141_s13 = sphi %s1171_s13, %s1415_s13   ;;  %s1137_s12 = sphi %s1169_s12, %s1414_s12  }
   0x3   : > { %s17_s17 = ssub.s32 %s1145_s14, %s1186_s16  ;;  %s20_s18 = sadd.s32 1, %s1141_s13 }
   0x4   : > { %p18_p0 = scmp.eq.s32.totalorder %s17_s17, 0  ;;  %p27_p1 = scmp.ne.s32.totalorder %s1141_s13, %s1137_s12 }
   0x5   : > { %p28_p2 = scmp.eq.s32.totalorder %s1145_s14, 0  ;;  %p936_p4 = scmp.ge.s32.totalorder %s1145_s14, 2 }
   0x6   : > { %s1195_s19 = scalar_select %p18_p0, %s1141_s13, %s20_s18  }
   0x7   : > { %p29_p3 = por %p28_p2, %p27_p1  ;;  %127 = sbr.rel (%p936_p4) target bundleno = 45 (0x2d), region = 24 }
   0xe   : > { %130 = sbr.rel (!%p29_p3) target bundleno = 45 (0x2d), region = 28  ;;  %s132_s20 = sand.u32 (%p29_p3), 1, %s1141_s13  }
   0xf   : > { %s1004_s21 = sshll.u32 (%p29_p3), %s1145_s14, 3  ;;  %s1008_s22 = smul.u32 (%p29_p3), 432, %s132_s20 }
  0x10   : > { %s1203_s25 = scalar_lea.vmem (%p29_p3), %s1410_s0, %s1004_s21 }
  0x11   : > { %v271_v0 = vld [vmem:[%s1203_s25] sm:$0xff] (%p29_p3)  ;;  %v273_v1 = vld [vmem:[%s1203_s25 + $0x10] sm:$0xff] (%p29_p3)  ;;  %s1211_s26 = scalar_lea.vmem (%p29_p3), [#allocation2], %s1008_s22 }
  0x12   : > { %v275_v2 = vld [vmem:[%s1203_s25 + $0x20] sm:$0xff] (%p29_p3)  ;;  %v277_v3 = vld [vmem:[%s1203_s25 + $0x30] sm:$0xff] (%p29_p3)  ;;  %272 = vst [vmem:[%s1211_s26] sm:$0xff] (%p29_p3), %v271_v0  ;;  %274 = vst [vmem:[%s1211_s26 + $0x8] sm:$0xff] (%p29_p3), %v273_v1 }
  0x13   : > { %v279_v4 = vld [vmem:[%s1203_s25 + $0x40] sm:$0xff] (%p29_p3)  ;;  %v281_v5 = vld [vmem:[%s1203_s25 + $0x50] sm:$0xff] (%p29_p3)  ;;  %276 = vst [vmem:[%s1211_s26 + $0x10] sm:$0xff] (%p29_p3), %v275_v2  ;;  %278 = vst [vmem:[%s1211_s26 + $0x18] sm:$0xff] (%p29_p3), %v277_v3 }
  0x14   : > { %280 = vst [vmem:[%s1211_s26 + $0x20] sm:$0xff] (%p29_p3), %v279_v4  ;;  %282 = vst [vmem:[%s1211_s26 + $0x28] sm:$0xff] (%p29_p3), %v281_v5  ;;  %v283_v6 = vld [vmem:[%s1203_s25 + $0x60] sm:$0xff] (%p29_p3)  ;;  %v285_v7 = vld [vmem:[%s1203_s25 + $0x70] sm:$0xff] (%p29_p3) }
  0x15   : > { %v287_v8 = vld [vmem:[%s1203_s25 + $0x80] sm:$0xff]  ;;  %284 = vst [vmem:[%s1211_s26 + $0x30] sm:$0xff] %v283_v6  ;;  %286 = vst [vmem:[%s1211_s26 + $0x38] sm:$0xff] %v285_v7  ;;  %v289_v9 = vld [vmem:[%s1203_s25 + $0x90] sm:$0xff] }
  0x16   : > { %288 = vst [vmem:[%s1211_s26 + $0x40] sm:$0xff] %v287_v8  ;;  %v291_v10 = vld [vmem:[%s1203_s25 + $0xa0] sm:$0xff]  ;;  %v293_v11 = vld [vmem:[%s1203_s25 + $0xb0] sm:$0xff]  ;;  %290 = vst [vmem:[%s1211_s26 + $0x48] sm:$0xff] %v289_v9 }
  0x17   : > { %292 = vst [vmem:[%s1211_s26 + $0x50] sm:$0xff] %v291_v10  ;;  %294 = vst [vmem:[%s1211_s26 + $0x58] sm:$0xff] %v293_v11  ;;  %v295_v12 = vld [vmem:[%s1203_s25 + $0xc0] sm:$0xff]  ;;  %v297_v13 = vld [vmem:[%s1203_s25 + $0xd0] sm:$0xff] }
  0x18   : > { %v299_v14 = vld [vmem:[%s1203_s25 + $0xe0] sm:$0xff]  ;;  %296 = vst [vmem:[%s1211_s26 + $0x60] sm:$0xff] %v295_v12  ;;  %298 = vst [vmem:[%s1211_s26 + $0x68] sm:$0xff] %v297_v13  ;;  %v301_v15 = vld [vmem:[%s1203_s25 + $0xf0] sm:$0xff] }
  0x19   : > { %300 = vst [vmem:[%s1211_s26 + $0x70] sm:$0xff] %v299_v14  ;;  %v303_v16 = vld [vmem:[%s1203_s25 + $0x100] sm:$0xff]  ;;  %v305_v17 = vld [vmem:[%s1203_s25 + $0x110] sm:$0xff]  ;;  %302 = vst [vmem:[%s1211_s26 + $0x78] sm:$0xff] %v301_v15 }
  0x1a   : > { %304 = vst [vmem:[%s1211_s26 + $0x80] sm:$0xff] %v303_v16  ;;  %306 = vst [vmem:[%s1211_s26 + $0x88] sm:$0xff] %v305_v17  ;;  %v307_v18 = vld [vmem:[%s1203_s25 + $0x120] sm:$0xff]  ;;  %v309_v19 = vld [vmem:[%s1203_s25 + $0x130] sm:$0xff] }
  0x1b   : > { %v311_v20 = vld [vmem:[%s1203_s25 + $0x140] sm:$0xff]  ;;  %308 = vst [vmem:[%s1211_s26 + $0x90] sm:$0xff] %v307_v18  ;;  %310 = vst [vmem:[%s1211_s26 + $0x98] sm:$0xff] %v309_v19  ;;  %v313_v21 = vld [vmem:[%s1203_s25 + $0x150] sm:$0xff] }
  0x1c   : > { %312 = vst [vmem:[%s1211_s26 + $0xa0] sm:$0xff] %v311_v20  ;;  %v315_v22 = vld [vmem:[%s1203_s25 + $0x160] sm:$0xff]  ;;  %v317_v23 = vld [vmem:[%s1203_s25 + $0x170] sm:$0xff]  ;;  %314 = vst [vmem:[%s1211_s26 + $0xa8] sm:$0xff] %v313_v21 }
  0x1d   : > { %316 = vst [vmem:[%s1211_s26 + $0xb0] sm:$0xff] %v315_v22  ;;  %318 = vst [vmem:[%s1211_s26 + $0xb8] sm:$0xff] %v317_v23  ;;  %v319_v24 = vld [vmem:[%s1203_s25 + $0x180] sm:$0xff]  ;;  %v321_v25 = vld [vmem:[%s1203_s25 + $0x190] sm:$0xff] }
  0x1e   : > { %v323_v26 = vld [vmem:[%s1203_s25 + $0x1a0] sm:$0xff]  ;;  %320 = vst [vmem:[%s1211_s26 + $0xc0] sm:$0xff] %v319_v24  ;;  %322 = vst [vmem:[%s1211_s26 + $0xc8] sm:$0xff] %v321_v25  ;;  %v325_v27 = vld [vmem:[%s1203_s25 + $0x1b0] sm:$0xff] }
  0x1f   : > { %324 = vst [vmem:[%s1211_s26 + $0xd0] sm:$0xff] %v323_v26  ;;  %v327_v28 = vld [vmem:[%s1203_s25 + $0x1c0] sm:$0xff]  ;;  %v329_v29 = vld [vmem:[%s1203_s25 + $0x1d0] sm:$0xff]  ;;  %326 = vst [vmem:[%s1211_s26 + $0xd8] sm:$0xff] %v325_v27 }
  0x20   : > { %328 = vst [vmem:[%s1211_s26 + $0xe0] sm:$0xff] %v327_v28  ;;  %330 = vst [vmem:[%s1211_s26 + $0xe8] sm:$0xff] %v329_v29  ;;  %v331_v30 = vld [vmem:[%s1203_s25 + $0x1e0] sm:$0xff]  ;;  %v333_v31 = vld [vmem:[%s1203_s25 + $0x1f0] sm:$0xff] }
  0x21   : > { %v335_v32 = vld [vmem:[%s1203_s25 + $0x200] sm:$0xff]  ;;  %332 = vst [vmem:[%s1211_s26 + $0xf0] sm:$0xff] %v331_v30  ;;  %334 = vst [vmem:[%s1211_s26 + $0xf8] sm:$0xff] %v333_v31  ;;  %v337_v33 = vld [vmem:[%s1203_s25 + $0x210] sm:$0xff] }
  0x22   : > { %336 = vst [vmem:[%s1211_s26 + $0x100] sm:$0xff] %v335_v32  ;;  %v339_v34 = vld [vmem:[%s1203_s25 + $0x220] sm:$0xff]  ;;  %v341_v35 = vld [vmem:[%s1203_s25 + $0x230] sm:$0xff]  ;;  %338 = vst [vmem:[%s1211_s26 + $0x108] sm:$0xff] %v337_v33 }
  0x23   : > { %340 = vst [vmem:[%s1211_s26 + $0x110] sm:$0xff] %v339_v34  ;;  %342 = vst [vmem:[%s1211_s26 + $0x118] sm:$0xff] %v341_v35  ;;  %v343_v36 = vld [vmem:[%s1203_s25 + $0x240] sm:$0xff]  ;;  %v345_v37 = vld [vmem:[%s1203_s25 + $0x250] sm:$0xff] }
  0x24   : > { %v347_v38 = vld [vmem:[%s1203_s25 + $0x260] sm:$0xff]  ;;  %344 = vst [vmem:[%s1211_s26 + $0x120] sm:$0xff] %v343_v36  ;;  %346 = vst [vmem:[%s1211_s26 + $0x128] sm:$0xff] %v345_v37  ;;  %v349_v39 = vld [vmem:[%s1203_s25 + $0x270] sm:$0xff] }
  0x25   : > { %348 = vst [vmem:[%s1211_s26 + $0x130] sm:$0xff] %v347_v38  ;;  %v351_v40 = vld [vmem:[%s1203_s25 + $0x280] sm:$0xff]  ;;  %v353_v41 = vld [vmem:[%s1203_s25 + $0x290] sm:$0xff]  ;;  %350 = vst [vmem:[%s1211_s26 + $0x138] sm:$0xff] %v349_v39 }
  0x26   : > { %352 = vst [vmem:[%s1211_s26 + $0x140] sm:$0xff] %v351_v40  ;;  %354 = vst [vmem:[%s1211_s26 + $0x148] sm:$0xff] %v353_v41  ;;  %v355_v42 = vld [vmem:[%s1203_s25 + $0x2a0] sm:$0xff]  ;;  %v357_v43 = vld [vmem:[%s1203_s25 + $0x2b0] sm:$0xff] }
  0x27   : > { %v359_v44 = vld [vmem:[%s1203_s25 + $0x2c0] sm:$0xff]  ;;  %356 = vst [vmem:[%s1211_s26 + $0x150] sm:$0xff] %v355_v42  ;;  %358 = vst [vmem:[%s1211_s26 + $0x158] sm:$0xff] %v357_v43  ;;  %v361_v45 = vld [vmem:[%s1203_s25 + $0x2d0] sm:$0xff] }
  0x28   : > { %360 = vst [vmem:[%s1211_s26 + $0x160] sm:$0xff] %v359_v44  ;;  %v363_v46 = vld [vmem:[%s1203_s25 + $0x2e0] sm:$0xff]  ;;  %v365_v47 = vld [vmem:[%s1203_s25 + $0x2f0] sm:$0xff]  ;;  %362 = vst [vmem:[%s1211_s26 + $0x168] sm:$0xff] %v361_v45 }
  0x29   : > { %364 = vst [vmem:[%s1211_s26 + $0x170] sm:$0xff] %v363_v46  ;;  %366 = vst [vmem:[%s1211_s26 + $0x178] sm:$0xff] %v365_v47  ;;  %v367_v48 = vld [vmem:[%s1203_s25 + $0x300] sm:$0xff]  ;;  %v369_v49 = vld [vmem:[%s1203_s25 + $0x310] sm:$0xff] }
  0x2a   : > { %v371_v50 = vld [vmem:[%s1203_s25 + $0x320] sm:$0xff]  ;;  %368 = vst [vmem:[%s1211_s26 + $0x180] sm:$0xff] %v367_v48  ;;  %370 = vst [vmem:[%s1211_s26 + $0x188] sm:$0xff] %v369_v49  ;;  %v373_v51 = vld [vmem:[%s1203_s25 + $0x330] sm:$0xff] }
  0x2b   : > { %372 = vst [vmem:[%s1211_s26 + $0x190] sm:$0xff] %v371_v50  ;;  %v375_v52 = vld [vmem:[%s1203_s25 + $0x340] sm:$0xff]  ;;  %v377_v53 = vld [vmem:[%s1203_s25 + $0x350] sm:$0xff]  ;;  %374 = vst [vmem:[%s1211_s26 + $0x198] sm:$0xff] %v373_v51 }
  0x2c   : > { %376 = vst [vmem:[%s1211_s26 + $0x1a0] sm:$0xff] %v375_v52  ;;  %378 = vst [vmem:[%s1211_s26 + $0x1a8] sm:$0xff] %v377_v53 }
  0x2d PF: > { %p939_p5 = scmp.ge.s32.totalorder %s1145_s14, 1  ;;  %p383_p6 = scmp.lt.s32.totalorder %s1145_s14, 3 }
  0x2f   : > { %p384_p7 = pnand %p939_p5, %p383_p6 }
  0x30   : > { %s390_s27 = sand.u32 (!%p384_p7), 1, %s1137_s12   ;;  %v1321_v54 = vld [vmem:[%s1411_s1 + $0x8] sm:$0xff] (!%p384_p7)  ;;  %vm760_vm0 = vcmask (!%p384_p7), 392192   ;;  %v1326_v55 = vld [vmem:[%s1411_s1] sm:$0xff] (!%p384_p7)  ;;  %v1147_v59 = vmov (!%p384_p7), 0   ;;  %v1148_v63 = vmov (!%p384_p7), 1  }
  0x31   : > { %387 = sbr.rel (%p384_p7) target bundleno = 342 (0x156), region = 66  ;;  %v846_v56 = vld [vmem:[%s1412_s2] sm:$0xff] (!%p384_p7)  ;;  %v945_v57 = vcombine.high (!%p384_p7), %v1321_v54, %v1321_v54  ;;  %v943_v58 = vcombine.high (!%p384_p7), %v1326_v55, %v1326_v55  ;;  %1036 = vset.pattern.permute.xlu0 (!%p384_p7), %v1147_v59  ;;  %v944_v46 = vcombine.low (!%p384_p7), %v1321_v54, %v1321_v54  ;;  %v942_v52 = vcombine.low (!%p384_p7), %v1326_v55, %v1326_v55  ;;  %s940_s9 = sshll.u32 (!%p384_p7), %s933_s15, 1 }
  0x32   : > { %s1009_s7 = smul.u32 (!%p384_p7), 432, %s390_s27  ;;  %849 = vperm.xlu0 (!%p384_p7), %1036, %v846_v56   ;;  %p415_p8 = scmp.lt.s32.totalorder (!%p384_p7), %s940_s9, 3 }
  0x33   : > { %1000 = vmatprep.mubr.msk.bf16.mxu0 (!%p384_p7), %vm760_vm0, %v945_v57  ;;  %796 = vmatprep.mubr.bf16.mxu1 (!%p384_p7), %v943_v58 }
  0x34   : > { %s1335_s8 = scalar_lea.vmem (!%p384_p7), [#allocation2], %s1009_s7 }
  0x35   : > { %v1038_v60 = vld [vmem:[%s1335_s8 + $0x4] ss:$8 sps:$4 sm:$0xff] (!%p384_p7)   ;;  %v1040_v61 = vld [vmem:[%s1335_s8] ss:$8 sps:$4 sm:$0xff] (!%p384_p7)   ;;  %v1041_v62 = vld [vmem:[%s1335_s8 + $0x14] ss:$8 sps:$4 sm:$0xff] (!%p384_p7)  }
  0x36   : > { %764 = vmatprep.subr.bf16.mxu1 (!%p384_p7), %v1038_v60  ;;  %1037 = vset.pattern.permute.xlu0 (!%p384_p7), %v1148_v63  ;;  %v1043_v0 = vld [vmem:[%s1335_s8 + $0x10] ss:$8 sps:$4 sm:$0xff] (!%p384_p7)   ;;  %v1044_v1 = vld [vmem:[%s1335_s8 + $0x24] ss:$8 sps:$4 sm:$0xff] (!%p384_p7)   ;;  %v1046_v2 = vld [vmem:[%s1335_s8 + $0x20] ss:$8 sps:$4 sm:$0xff] (!%p384_p7)  }
  0x37   : > { %765 = vmatpush1.bf16.msra.mxu1 (!%p384_p7), %v1040_v61  ;;  %855 = vperm.xlu0 (!%p384_p7), %1037, %v846_v56   ;;  %v1053_v3 = vld [vmem:[%s1335_s8 + $0x104] ss:$8 sps:$4 sm:$0xff] (!%p384_p7)   ;;  %v1055_v4 = vld [vmem:[%s1335_s8 + $0x100] ss:$8 sps:$4 sm:$0xff] (!%p384_p7)   ;;  %v1047_v5 = vld [vmem:[%s1335_s8 + $0x34] ss:$8 sps:$4 sm:$0xff] (!%p384_p7)  }
  0x38   : > { %766 = vmatprep.subr.bf16.mxu1 %v1041_v62  ;;  %805 = vmatprep.subr.bf16.mxu0 %v1053_v3  ;;  %v1059_v6 = vld [vmem:[%s1335_s8 + $0x114] ss:$8 sps:$4 sm:$0xff]   ;;  %v1061_v7 = vld [vmem:[%s1335_s8 + $0x110] ss:$8 sps:$4 sm:$0xff]   ;;  %v1050_v9 = vld [vmem:[%s1335_s8 + $0x44] ss:$8 sps:$4 sm:$0xff]  }
  0x39   : > { %806 = vmatpush1.bf16.msra.mxu0 %v1055_v4  ;;  %v1049_v8 = vld [vmem:[%s1335_s8 + $0x30] ss:$8 sps:$4 sm:$0xff]   ;;  %v1065_v10 = vld [vmem:[%s1335_s8 + $0x124] ss:$8 sps:$4 sm:$0xff]   ;;  %v1067_v11 = vld [vmem:[%s1335_s8 + $0x120] ss:$8 sps:$4 sm:$0xff]  }
  0x3a   : > { %807 = vmatprep.subr.bf16.mxu0 %v1059_v6  ;;  %v1052_v12 = vld [vmem:[%s1335_s8 + $0x40] ss:$8 sps:$4 sm:$0xff]   ;;  %v1071_v13 = vld [vmem:[%s1335_s8 + $0x134] ss:$8 sps:$4 sm:$0xff]   ;;  %v1073_v15 = vld [vmem:[%s1335_s8 + $0x130] ss:$8 sps:$4 sm:$0xff]  }
  0x3b   : > { %767 = vmatpush1.bf16.msra.mxu1 %v1043_v0  ;;  %v1056_v14 = vld [vmem:[%s1335_s8 + $0x54] ss:$8 sps:$4 sm:$0xff]   ;;  %v1058_v16 = vld [vmem:[%s1335_s8 + $0x50] ss:$8 sps:$4 sm:$0xff]   ;;  %v1077_v17 = vld [vmem:[%s1335_s8 + $0x144] ss:$8 sps:$4 sm:$0xff]  }
  0x3c   : > { %768 = vmatprep.subr.bf16.mxu1 %v1044_v1  ;;  %v1062_v18 = vld [vmem:[%s1335_s8 + $0x64] ss:$8 sps:$4 sm:$0xff]   ;;  %v1079_v19 = vld [vmem:[%s1335_s8 + $0x140] ss:$8 sps:$4 sm:$0xff]   ;;  %v1083_v21 = vld [vmem:[%s1335_s8 + $0x154] ss:$8 sps:$4 sm:$0xff]  }
  0x3d   : > { %808 = vmatpush1.bf16.msra.mxu0 %v1061_v7  ;;  %v1064_v20 = vld [vmem:[%s1335_s8 + $0x60] ss:$8 sps:$4 sm:$0xff]   ;;  %v1068_v22 = vld [vmem:[%s1335_s8 + $0x74] ss:$8 sps:$4 sm:$0xff]   ;;  %v1085_v23 = vld [vmem:[%s1335_s8 + $0x150] ss:$8 sps:$4 sm:$0xff]  }
  0x3e   : > { %809 = vmatprep.subr.bf16.mxu0 %v1065_v10  ;;  %v1070_v24 = vld [vmem:[%s1335_s8 + $0x70] ss:$8 sps:$4 sm:$0xff]   ;;  %v1089_v25 = vld [vmem:[%s1335_s8 + $0x164] ss:$8 sps:$4 sm:$0xff]   ;;  %v1091_v27 = vld [vmem:[%s1335_s8 + $0x160] ss:$8 sps:$4 sm:$0xff]  }
  0x3f   : > { %769 = vmatpush1.bf16.msra.mxu1 %v1046_v2  ;;  %v1074_v26 = vld [vmem:[%s1335_s8 + $0x84] ss:$8 sps:$4 sm:$0xff]   ;;  %v1076_v28 = vld [vmem:[%s1335_s8 + $0x80] ss:$8 sps:$4 sm:$0xff]   ;;  %v1095_v29 = vld [vmem:[%s1335_s8 + $0x174] ss:$8 sps:$4 sm:$0xff]  }
  0x40   : > { %770 = vmatprep.subr.bf16.mxu1 %v1047_v5  ;;  %v1080_v30 = vld [vmem:[%s1335_s8 + $0x94] ss:$8 sps:$4 sm:$0xff]   ;;  %v1097_v31 = vld [vmem:[%s1335_s8 + $0x170] ss:$8 sps:$4 sm:$0xff]   ;;  %v1101_v33 = vld [vmem:[%s1335_s8 + $0x184] ss:$8 sps:$4 sm:$0xff]  }
  0x41   : > { %810 = vmatpush1.bf16.msra.mxu0 %v1067_v11  ;;  %v1082_v32 = vld [vmem:[%s1335_s8 + $0x90] ss:$8 sps:$4 sm:$0xff]   ;;  %v1086_v34 = vld [vmem:[%s1335_s8 + $0xa4] ss:$8 sps:$4 sm:$0xff]   ;;  %v1103_v35 = vld [vmem:[%s1335_s8 + $0x180] ss:$8 sps:$4 sm:$0xff]  }
  0x42   : > { %811 = vmatprep.subr.bf16.mxu0 %v1071_v13  ;;  %v1088_v36 = vld [vmem:[%s1335_s8 + $0xa0] ss:$8 sps:$4 sm:$0xff]   ;;  %v1107_v37 = vld [vmem:[%s1335_s8 + $0x194] ss:$8 sps:$4 sm:$0xff]   ;;  %v1109_v39 = vld [vmem:[%s1335_s8 + $0x190] ss:$8 sps:$4 sm:$0xff]  }
  0x43   : > { %771 = vmatpush1.bf16.msra.mxu1 %v1049_v8  ;;  %v1092_v38 = vld [vmem:[%s1335_s8 + $0xb4] ss:$8 sps:$4 sm:$0xff]   ;;  %v1094_v40 = vld [vmem:[%s1335_s8 + $0xb0] ss:$8 sps:$4 sm:$0xff]   ;;  %v1113_v41 = vld [vmem:[%s1335_s8 + $0x1a4] ss:$8 sps:$4 sm:$0xff]  }
  0x44   : > { %772 = vmatprep.subr.bf16.mxu1 %v1050_v9  ;;  %v1098_v42 = vld [vmem:[%s1335_s8 + $0xc4] ss:$8 sps:$4 sm:$0xff]   ;;  %v1115_v43 = vld [vmem:[%s1335_s8 + $0x1a0] ss:$8 sps:$4 sm:$0xff]   ;;  %v1104_v45 = vld [vmem:[%s1335_s8 + $0xd4] ss:$8 sps:$4 sm:$0xff]  }
  0x45   : > { %812 = vmatpush1.bf16.msra.mxu0 %v1073_v15  ;;  %v1100_v44 = vld [vmem:[%s1335_s8 + $0xc0] ss:$8 sps:$4 sm:$0xff]   ;;  %v1106_v47 = vld [vmem:[%s1335_s8 + $0xd0] ss:$8 sps:$4 sm:$0xff]   ;;  %v1110_v48 = vld [vmem:[%s1335_s8 + $0xe4] ss:$8 sps:$4 sm:$0xff]  }
  0x46   : > { %813 = vmatprep.subr.bf16.mxu0 %v1077_v17  ;;  %v1112_v49 = vld [vmem:[%s1335_s8 + $0xe0] ss:$8 sps:$4 sm:$0xff]   ;;  %v1116_v50 = vld [vmem:[%s1335_s8 + $0xf4] ss:$8 sps:$4 sm:$0xff]   ;;  %v1120_v51 = vld [vmem:[%s1335_s8 + $0xf0] ss:$8 sps:$4 sm:$0xff]  }
  0x47   : > { %773 = vmatpush1.bf16.msra.mxu1 %v1052_v12  ;;  %s1418_s9 = smov (!%p415_p8, %s940_s9), 3 }
  0x48   : > { %774 = vmatprep.subr.bf16.mxu1 %v1056_v14  ;;  %s941_s10 = sshll.u32 %s1418_s9, 2 }
  0x49   : > { %814 = vmatpush1.bf16.msra.mxu0 %v1079_v19  ;;  %s418_s14 = scalar_lea.vmem %s1413_s3, %s941_s10 }
  0x4a   : > { %815 = vmatprep.subr.bf16.mxu0 %v1083_v21 }
  0x4b   : > { %775 = vmatpush1.bf16.msra.mxu1 %v1058_v16 }
  0x4c   : > { %776 = vmatprep.subr.bf16.mxu1 %v1062_v18 }
  0x4d   : > { %816 = vmatpush1.bf16.msra.mxu0 %v1085_v23 }
  0x4e   : > { %817 = vmatprep.subr.bf16.mxu0 %v1089_v25 }
  0x4f   : > { %777 = vmatpush1.bf16.msra.mxu1 %v1064_v20 }
  0x50   : > { %778 = vmatprep.subr.bf16.mxu1 %v1068_v22 }
  0x51   : > { %818 = vmatpush1.bf16.msra.mxu0 %v1091_v27 }
  0x52   : > { %819 = vmatprep.subr.bf16.mxu0 %v1095_v29 }
  0x53   : > { %779 = vmatpush1.bf16.msra.mxu1 %v1070_v24 }
  0x54   : > { %780 = vmatprep.subr.bf16.mxu1 %v1074_v26 }
  0x55   : > { %820 = vmatpush1.bf16.msra.mxu0 %v1097_v31 }
  0x56   : > { %821 = vmatprep.subr.bf16.mxu0 %v1101_v33 }
  0x57   : > { %781 = vmatpush1.bf16.msra.mxu1 %v1076_v28 }
  0x58   : > { %782 = vmatprep.subr.bf16.mxu1 %v1080_v30 }
  0x59   : > { %822 = vmatpush1.bf16.msra.mxu0 %v1103_v35 }
  0x5a   : > { %823 = vmatprep.subr.bf16.mxu0 %v1107_v37 }
  0x5b   : > { %783 = vmatpush1.bf16.msra.mxu1 %v1082_v32 }
  0x5c   : > { %784 = vmatprep.subr.bf16.mxu1 %v1086_v34 }
  0x5d   : > { %824 = vmatpush1.bf16.msra.mxu0 %v1109_v39 }
  0x5e   : > { %825 = vmatprep.subr.bf16.mxu0 %v1113_v41 }
  0x5f   : > { %785 = vmatpush1.bf16.msra.mxu1 %v1088_v36 }
  0x60   : > { %786 = vmatprep.subr.bf16.mxu1 %v1092_v38 }
  0x61   : > { %826 = vmatpush1.bf16.msra.mxu0 %v1115_v43 }
  0x63   : > { %787 = vmatpush1.bf16.msra.mxu1 %v1094_v40 }
  0x64   : > { %788 = vmatprep.subr.bf16.mxu1 %v1098_v42  ;;  %838 = vmatmul.mubr.bf16.vlgmr.msra.gmra.mrb[0].mxu0 %v944_v46 }
  0x67   : > { %789 = vmatpush1.bf16.msra.mxu1 %v1100_v44 }
  0x68   : > { %790 = vmatprep.subr.bf16.mxu1 %v1104_v45 }
  0x6b   : > { %791 = vmatpush1.bf16.msra.mxu1 %v1106_v47 }
  0x6c   : > { %792 = vmatprep.subr.bf16.mxu1 %v1110_v48 }
  0x6f   : > { %793 = vmatpush1.bf16.msra.mxu1 %v1112_v49 }
  0x70   : > { %794 = vmatprep.subr.bf16.mxu1 %v1116_v50 }
  0x73   : > { %795 = vmatpush1.bf16.msra.mxu1 %v1120_v51 }
  0x76   : > { %797 = vmatmul.mubr.bf16.vlgmr.msra.gmra.mrb[0].mxu1 %v942_v52 }
  0xb1   : > { %v850_v58 = vpop.permute.xlu0 %849 }
  0xb6   : > { %v856_v0 = vpop.permute.xlu0 %855 }
 0x137   : > { %v839_v53 = vpop.f32.mrb[0].mxu0 }
 0x138   : > { %v841_v54 = vpop.f32.mrb[1].mxu0 }
 0x139   : > { %v843_v56 = vpop.f32.mrb[2].mxu0 }
 0x13a   : > { %v844_v57 = vpop.f32.mrb[3].mxu0 }
 0x149   : > { %v798_v59 = vpop.f32.mrb[0].mxu1 }
 0x14a   : > { %v840_v60 = vadd.f32 %v839_v53, %v798_v59  ;;  %v800_v61 = vpop.f32.mrb[1].mxu1 }
 0x14b   : > { %v842_v62 = vadd.f32 %v841_v54, %v800_v61  ;;  %v802_v63 = vpop.f32.mrb[2].mxu1 }
 0x14c   : > { %v803_v1 = vpop.f32.mrb[3].mxu1  ;;  %v852_v2 = vmul.f32 %v850_v58, %v840_v60 }
 0x14d   : > { %v853_v55 = vmul.f32 %v850_v58, %v842_v62 }
 0x14e   : > { %v858_v3 = vadd.f32 %v856_v0, %v852_v2 }
 0x14f   : > { %v859_v4 = vadd.f32 %v856_v0, %v853_v55 }
 0x150   : > { %v860_v5 = vmax.f32 %v858_v3, 0.0 }
 0x151   : > { %v861_v6 = vmax.f32 %v859_v4, 0.0 }
 0x153   : > { %v1005_v7 = vpack.c.bf16 %v861_v6, %v860_v5 }
 0x155   : > { %870 = vst [vmem:[%s418_s14] sm:$0xff] %v1005_v7 }
 0x156 PF: > { %p10_p9 = scmp.ge.s32.totalorder %s1186_s16, 4   ;;  %s1414_s12 = smov %s1141_s13 }
 0x157   : > { %s1415_s13 = smov %s1195_s19  ;;  %s1416_s14 = smov %s1186_s16 }
 0x158   :  { %12 = sbr.rel (!%p10_p9) target bundleno = 2 (0x2), region = 105 }

// kernel: forward.13
= control target key start
LH: loop header
LB: loop body
LE: loop exit
PB: predicated region body
PF: predicated region fallthrough
CT: control target
= control target key end

     0   :  { %s760_s9 = smov 0   ;;  %s762_s10 = smov 0   ;;  %s917_s0 = inlined_call_operand.vmem [shape: bf16[240,512], index: 0, kind: input, shape index: {}]   ;;  %s918_s1 = inlined_call_operand.vmem [shape: bf16[8,240], index: 1, kind: input, shape index: {}]   ;;  %s919_s2 = inlined_call_operand.vmem [shape: bf16[8,512], index: 2, kind: output, shape index: {}]  }
   0x1   :  { %s764_s11 = smov 0  }
   0x2 LB: > { %s601_s12 = sadd.s32 4294967295, %s743_s11   ;;  %s777_s13 = sadd.s32 1, %s743_s11   ;;  %s743_s11 = sphi %s764_s11, %s922_s11   ;;  %s739_s10 = sphi %s762_s10, %s921_s10   ;;  %s735_s9 = sphi %s760_s9, %s920_s9  }
   0x3   : > { %s16_s14 = ssub.s32 %s743_s11, %s777_s13  ;;  %s19_s15 = sadd.s32 1, %s739_s10 }
   0x4   : > { %p17_p0 = scmp.eq.s32.totalorder %s16_s14, 0  ;;  %p26_p1 = scmp.ne.s32.totalorder %s739_s10, %s735_s9 }
   0x5   : > { %p27_p2 = scmp.eq.s32.totalorder %s743_s11, 0  ;;  %p604_p4 = scmp.ge.s32.totalorder %s743_s11, 2 }
   0x6   : > { %s786_s16 = scalar_select %p17_p0, %s739_s10, %s19_s15  }
   0x7   : > { %p28_p3 = por %p27_p2, %p26_p1  ;;  %102 = sbr.rel (%p604_p4) target bundleno = 33 (0x21), region = 20 }
   0xe   : > { %105 = sbr.rel (!%p28_p3) target bundleno = 33 (0x21), region = 24  ;;  %s107_s17 = sand.u32 (%p28_p3), 1, %s739_s10  }
   0xf   : > { %s646_s18 = sshll.u32 (%p28_p3), %s743_s11, 3  ;;  %s648_s19 = smul.u32 (%p28_p3), 240, %s107_s17 }
  0x10   : > { %s794_s22 = scalar_lea.vmem (%p28_p3), %s917_s0, %s646_s18 }
  0x11   : > { %v198_v0 = vld [vmem:[%s794_s22] sm:$0xff] (%p28_p3)  ;;  %v200_v1 = vld [vmem:[%s794_s22 + $0x10] sm:$0xff] (%p28_p3)  ;;  %s802_s23 = scalar_lea.vmem (%p28_p3), [#allocation2], %s648_s19 }
  0x12   : > { %v202_v2 = vld [vmem:[%s794_s22 + $0x20] sm:$0xff] (%p28_p3)  ;;  %v204_v3 = vld [vmem:[%s794_s22 + $0x30] sm:$0xff] (%p28_p3)  ;;  %199 = vst [vmem:[%s802_s23] sm:$0xff] (%p28_p3), %v198_v0  ;;  %201 = vst [vmem:[%s802_s23 + $0x8] sm:$0xff] (%p28_p3), %v200_v1 }
  0x13   : > { %v206_v4 = vld [vmem:[%s794_s22 + $0x40] sm:$0xff] (%p28_p3)  ;;  %v208_v5 = vld [vmem:[%s794_s22 + $0x50] sm:$0xff] (%p28_p3)  ;;  %203 = vst [vmem:[%s802_s23 + $0x10] sm:$0xff] (%p28_p3), %v202_v2  ;;  %205 = vst [vmem:[%s802_s23 + $0x18] sm:$0xff] (%p28_p3), %v204_v3 }
  0x14   : > { %207 = vst [vmem:[%s802_s23 + $0x20] sm:$0xff] (%p28_p3), %v206_v4  ;;  %209 = vst [vmem:[%s802_s23 + $0x28] sm:$0xff] (%p28_p3), %v208_v5  ;;  %v210_v6 = vld [vmem:[%s794_s22 + $0x60] sm:$0xff] (%p28_p3)  ;;  %v212_v7 = vld [vmem:[%s794_s22 + $0x70] sm:$0xff] (%p28_p3) }
  0x15   : > { %v214_v8 = vld [vmem:[%s794_s22 + $0x80] sm:$0xff]  ;;  %211 = vst [vmem:[%s802_s23 + $0x30] sm:$0xff] %v210_v6  ;;  %213 = vst [vmem:[%s802_s23 + $0x38] sm:$0xff] %v212_v7  ;;  %v216_v9 = vld [vmem:[%s794_s22 + $0x90] sm:$0xff] }
  0x16   : > { %215 = vst [vmem:[%s802_s23 + $0x40] sm:$0xff] %v214_v8  ;;  %v218_v10 = vld [vmem:[%s794_s22 + $0xa0] sm:$0xff]  ;;  %v220_v11 = vld [vmem:[%s794_s22 + $0xb0] sm:$0xff]  ;;  %217 = vst [vmem:[%s802_s23 + $0x48] sm:$0xff] %v216_v9 }
  0x17   : > { %219 = vst [vmem:[%s802_s23 + $0x50] sm:$0xff] %v218_v10  ;;  %221 = vst [vmem:[%s802_s23 + $0x58] sm:$0xff] %v220_v11  ;;  %v222_v12 = vld [vmem:[%s794_s22 + $0xc0] sm:$0xff]  ;;  %v224_v13 = vld [vmem:[%s794_s22 + $0xd0] sm:$0xff] }
  0x18   : > { %v226_v14 = vld [vmem:[%s794_s22 + $0xe0] sm:$0xff]  ;;  %223 = vst [vmem:[%s802_s23 + $0x60] sm:$0xff] %v222_v12  ;;  %225 = vst [vmem:[%s802_s23 + $0x68] sm:$0xff] %v224_v13  ;;  %v228_v15 = vld [vmem:[%s794_s22 + $0xf0] sm:$0xff] }
  0x19   : > { %227 = vst [vmem:[%s802_s23 + $0x70] sm:$0xff] %v226_v14  ;;  %v230_v16 = vld [vmem:[%s794_s22 + $0x100] sm:$0xff]  ;;  %v232_v17 = vld [vmem:[%s794_s22 + $0x110] sm:$0xff]  ;;  %229 = vst [vmem:[%s802_s23 + $0x78] sm:$0xff] %v228_v15 }
  0x1a   : > { %231 = vst [vmem:[%s802_s23 + $0x80] sm:$0xff] %v230_v16  ;;  %233 = vst [vmem:[%s802_s23 + $0x88] sm:$0xff] %v232_v17  ;;  %v234_v18 = vld [vmem:[%s794_s22 + $0x120] sm:$0xff]  ;;  %v236_v19 = vld [vmem:[%s794_s22 + $0x130] sm:$0xff] }
  0x1b   : > { %v238_v20 = vld [vmem:[%s794_s22 + $0x140] sm:$0xff]  ;;  %235 = vst [vmem:[%s802_s23 + $0x90] sm:$0xff] %v234_v18  ;;  %237 = vst [vmem:[%s802_s23 + $0x98] sm:$0xff] %v236_v19  ;;  %v240_v21 = vld [vmem:[%s794_s22 + $0x150] sm:$0xff] }
  0x1c   : > { %239 = vst [vmem:[%s802_s23 + $0xa0] sm:$0xff] %v238_v20  ;;  %v242_v22 = vld [vmem:[%s794_s22 + $0x160] sm:$0xff]  ;;  %v244_v23 = vld [vmem:[%s794_s22 + $0x170] sm:$0xff]  ;;  %241 = vst [vmem:[%s802_s23 + $0xa8] sm:$0xff] %v240_v21 }
  0x1d   : > { %243 = vst [vmem:[%s802_s23 + $0xb0] sm:$0xff] %v242_v22  ;;  %245 = vst [vmem:[%s802_s23 + $0xb8] sm:$0xff] %v244_v23  ;;  %v246_v24 = vld [vmem:[%s794_s22 + $0x180] sm:$0xff]  ;;  %v248_v25 = vld [vmem:[%s794_s22 + $0x190] sm:$0xff] }
  0x1e   : > { %v250_v26 = vld [vmem:[%s794_s22 + $0x1a0] sm:$0xff]  ;;  %247 = vst [vmem:[%s802_s23 + $0xc0] sm:$0xff] %v246_v24  ;;  %249 = vst [vmem:[%s802_s23 + $0xc8] sm:$0xff] %v248_v25  ;;  %v252_v27 = vld [vmem:[%s794_s22 + $0x1b0] sm:$0xff] }
  0x1f   : > { %251 = vst [vmem:[%s802_s23 + $0xd0] sm:$0xff] %v250_v26  ;;  %v254_v28 = vld [vmem:[%s794_s22 + $0x1c0] sm:$0xff]  ;;  %v256_v29 = vld [vmem:[%s794_s22 + $0x1d0] sm:$0xff]  ;;  %253 = vst [vmem:[%s802_s23 + $0xd8] sm:$0xff] %v252_v27 }
  0x20   : > { %255 = vst [vmem:[%s802_s23 + $0xe0] sm:$0xff] %v254_v28  ;;  %257 = vst [vmem:[%s802_s23 + $0xe8] sm:$0xff] %v256_v29 }
  0x21 PF: > { %p607_p5 = scmp.ge.s32.totalorder %s743_s11, 1  ;;  %p262_p6 = scmp.lt.s32.totalorder %s743_s11, 3 }
  0x23   : > { %p263_p7 = pnand %p607_p5, %p262_p6 }
  0x24   : > { %s269_s24 = sand.u32 (!%p263_p7), 1, %s735_s9   ;;  %v864_v30 = vld [vmem:[%s918_s1] sm:$0xff] (!%p263_p7)  ;;  %vm485_vm0 = vcmask (!%p263_p7), 916480   ;;  %s608_s29 = sshll.u32 (!%p263_p7), %s601_s12, 1 }
  0x25   : > { %266 = sbr.rel (%p263_p7) target bundleno = 318 (0x13e), region = 62  ;;  %v611_v31 = vcombine.high (!%p263_p7), %v864_v30, %v864_v30  ;;  %v610_v62 = vcombine.low (!%p263_p7), %v864_v30, %v864_v30  ;;  %p292_p8 = scmp.lt.s32.totalorder (!%p263_p7), %s608_s29, 3 }
  0x26   : > { %s649_s27 = smul.u32 (!%p263_p7), 240, %s269_s24 }
  0x27   : > { %642 = vmatprep.mubr.msk.bf16.mxu0 (!%p263_p7), %vm485_vm0, %v611_v31 }
  0x28   : > { %s868_s28 = scalar_lea.vmem (!%p263_p7), [#allocation2], %s649_s27 }
  0x29   : > { %v674_v32 = vld [vmem:[%s868_s28 + $0x4] ss:$8 sps:$4 sm:$0xff] (!%p263_p7)   ;;  %v676_v33 = vld [vmem:[%s868_s28] ss:$8 sps:$4 sm:$0xff] (!%p263_p7)   ;;  %v677_v34 = vld [vmem:[%s868_s28 + $0x14] ss:$8 sps:$4 sm:$0xff] (!%p263_p7)  }
  0x2a   : > { %489 = vmatprep.subr.bf16.mxu0 (!%p263_p7), %v674_v32  ;;  %v679_v35 = vld [vmem:[%s868_s28 + $0x10] ss:$8 sps:$4 sm:$0xff] (!%p263_p7)   ;;  %v680_v36 = vld [vmem:[%s868_s28 + $0x24] ss:$8 sps:$4 sm:$0xff] (!%p263_p7)   ;;  %v682_v37 = vld [vmem:[%s868_s28 + $0x20] ss:$8 sps:$4 sm:$0xff] (!%p263_p7)  }
  0x2b   : > { %490 = vmatpush1.bf16.msra.mxu0 (!%p263_p7), %v676_v33  ;;  %v683_v38 = vld [vmem:[%s868_s28 + $0x34] ss:$8 sps:$4 sm:$0xff] (!%p263_p7)   ;;  %v685_v39 = vld [vmem:[%s868_s28 + $0x30] ss:$8 sps:$4 sm:$0xff] (!%p263_p7)   ;;  %v686_v40 = vld [vmem:[%s868_s28 + $0x44] ss:$8 sps:$4 sm:$0xff] (!%p263_p7)  }
  0x2c   : > { %491 = vmatprep.subr.bf16.mxu0 %v677_v34  ;;  %v688_v41 = vld [vmem:[%s868_s28 + $0x40] ss:$8 sps:$4 sm:$0xff]   ;;  %v689_v42 = vld [vmem:[%s868_s28 + $0x54] ss:$8 sps:$4 sm:$0xff]   ;;  %v691_v43 = vld [vmem:[%s868_s28 + $0x50] ss:$8 sps:$4 sm:$0xff]  }
  0x2d   : > { %v692_v44 = vld [vmem:[%s868_s28 + $0x64] ss:$8 sps:$4 sm:$0xff]   ;;  %v694_v45 = vld [vmem:[%s868_s28 + $0x60] ss:$8 sps:$4 sm:$0xff]   ;;  %v695_v46 = vld [vmem:[%s868_s28 + $0x74] ss:$8 sps:$4 sm:$0xff]  }
  0x2e   : > { %v697_v47 = vld [vmem:[%s868_s28 + $0x70] ss:$8 sps:$4 sm:$0xff]   ;;  %v698_v48 = vld [vmem:[%s868_s28 + $0x84] ss:$8 sps:$4 sm:$0xff]   ;;  %v700_v49 = vld [vmem:[%s868_s28 + $0x80] ss:$8 sps:$4 sm:$0xff]  }
  0x2f   : > { %492 = vmatpush1.bf16.msra.mxu0 %v679_v35  ;;  %v701_v50 = vld [vmem:[%s868_s28 + $0x94] ss:$8 sps:$4 sm:$0xff]   ;;  %v703_v51 = vld [vmem:[%s868_s28 + $0x90] ss:$8 sps:$4 sm:$0xff]   ;;  %v704_v52 = vld [vmem:[%s868_s28 + $0xa4] ss:$8 sps:$4 sm:$0xff]  }
  0x30   : > { %493 = vmatprep.subr.bf16.mxu0 %v680_v36  ;;  %v706_v53 = vld [vmem:[%s868_s28 + $0xa0] ss:$8 sps:$4 sm:$0xff]   ;;  %v707_v54 = vld [vmem:[%s868_s28 + $0xb4] ss:$8 sps:$4 sm:$0xff]   ;;  %v709_v55 = vld [vmem:[%s868_s28 + $0xb0] ss:$8 sps:$4 sm:$0xff]  }
  0x31   : > { %v710_v56 = vld [vmem:[%s868_s28 + $0xc4] ss:$8 sps:$4 sm:$0xff]   ;;  %v712_v57 = vld [vmem:[%s868_s28 + $0xc0] ss:$8 sps:$4 sm:$0xff]   ;;  %v713_v58 = vld [vmem:[%s868_s28 + $0xd4] ss:$8 sps:$4 sm:$0xff]  }
  0x32   : > { %v715_v59 = vld [vmem:[%s868_s28 + $0xd0] ss:$8 sps:$4 sm:$0xff]   ;;  %v716_v60 = vld [vmem:[%s868_s28 + $0xe4] ss:$8 sps:$4 sm:$0xff]   ;;  %v718_v61 = vld [vmem:[%s868_s28 + $0xe0] ss:$8 sps:$4 sm:$0xff]  }
  0x33   : > { %494 = vmatpush1.bf16.msra.mxu0 %v682_v37  ;;  %s924_s29 = smov (!%p292_p8, %s608_s29), 3 }
  0x34   : > { %495 = vmatprep.subr.bf16.mxu0 %v683_v38  ;;  %s609_s30 = sshll.u32 %s924_s29, 2 }
  0x35   : > { %s295_s5 = scalar_lea.vmem %s919_s2, %s609_s30 }
  0x37   : > { %496 = vmatpush1.bf16.msra.mxu0 %v685_v39 }
  0x38   : > { %497 = vmatprep.subr.bf16.mxu0 %v686_v40 }
  0x3b   : > { %498 = vmatpush1.bf16.msra.mxu0 %v688_v41 }
  0x3c   : > { %499 = vmatprep.subr.bf16.mxu0 %v689_v42 }
  0x3f   : > { %500 = vmatpush1.bf16.msra.mxu0 %v691_v43 }
  0x40   : > { %501 = vmatprep.subr.bf16.mxu0 %v692_v44 }
  0x43   : > { %502 = vmatpush1.bf16.msra.mxu0 %v694_v45 }
  0x44   : > { %503 = vmatprep.subr.bf16.mxu0 %v695_v46 }
  0x47   : > { %504 = vmatpush1.bf16.msra.mxu0 %v697_v47 }
  0x48   : > { %505 = vmatprep.subr.bf16.mxu0 %v698_v48 }
  0x4b   : > { %506 = vmatpush1.bf16.msra.mxu0 %v700_v49 }
  0x4c   : > { %507 = vmatprep.subr.bf16.mxu0 %v701_v50 }
  0x4f   : > { %508 = vmatpush1.bf16.msra.mxu0 %v703_v51 }
  0x50   : > { %509 = vmatprep.subr.bf16.mxu0 %v704_v52 }
  0x53   : > { %510 = vmatpush1.bf16.msra.mxu0 %v706_v53 }
  0x54   : > { %511 = vmatprep.subr.bf16.mxu0 %v707_v54 }
  0x57   : > { %512 = vmatpush1.bf16.msra.mxu0 %v709_v55 }
  0x58   : > { %513 = vmatprep.subr.bf16.mxu0 %v710_v56 }
  0x5b   : > { %514 = vmatpush1.bf16.msra.mxu0 %v712_v57 }
  0x5c   : > { %515 = vmatprep.subr.bf16.mxu0 %v713_v58 }
  0x5f   : > { %516 = vmatpush1.bf16.msra.mxu0 %v715_v59 }
  0x60   : > { %517 = vmatprep.subr.bf16.mxu0 %v716_v60 }
  0x63   : > { %518 = vmatpush1.bf16.msra.mxu0 %v718_v61 }
  0x66   : > { %522 = vmatmul.mubr.bf16.vlgmr.msra.gmra.mrb[0].mxu0 %v610_v62 }
 0x139   : > { %v523_v63 = vpop.f32.mrb[0].mxu0 }
 0x13a   : > { %v525_v0 = vpop.f32.mrb[1].mxu0 }
 0x13b   : > { %v647_v1 = vpack.c.bf16 %v525_v0, %v523_v63  ;;  %v527_v2 = vpop.f32.mrb[2].mxu0 }
 0x13c   : > { %v528_v3 = vpop.f32.mrb[3].mxu0 }
 0x13d   : > { %538 = vst [vmem:[%s295_s5] sm:$0xff] %v647_v1 }
 0x13e PF: > { %p9_p9 = scmp.ge.s32.totalorder %s777_s13, 4   ;;  %s920_s9 = smov %s739_s10 }
 0x13f   : > { %s921_s10 = smov %s786_s16  ;;  %s922_s11 = smov %s777_s13 }
 0x140   :  { %11 = sbr.rel (!%p9_p9) target bundleno = 2 (0x2), region = 101 }

</bundles_post_ra>
